<compile_context>
chip_gen: v7x
topology: tpu7x:2x2x1
jax: 0.10.0
libtpu: 0.0.40
codegen_flags: <defaults>
</compile_context>

<pallas_src>
import numpy as np

import jax
import jax.numpy as jnp
from jax import lax
from jax.experimental import pallas as pl
from jax.experimental.pallas import tpu as pltpu


def _round_up(x, m):
    return (x + m - 1) // m * m


def _make_hw_masks(D, H, W):
    """(9, D*H*W) {0,1} masks over the flattened volume: mask[t, p] = 1 iff the
    (kh, kw) = divmod(t, 3) tap of output voxel p stays inside the H/W bounds.
    (The depth/kd bound is handled by the zeroed lane margin in the kernel.)"""
    h = np.arange(H)[:, None]
    w = np.arange(W)[None, :]
    masks = np.zeros((9, D * H * W), np.float32)
    for kh in range(3):
        for kw in range(3):
            ok = ((h + kh - 1 >= 0) & (h + kh - 1 < H)
                  & (w + kw - 1 >= 0) & (w + kw - 1 < W))            # (H, W)
            masks[kh * 3 + kw] = np.tile(ok.reshape(-1), D).astype(np.float32)
    return jnp.asarray(masks)


def _pack_params(params, c_pad, patch_dtype):
    """Pack PyTorch-layout (c_out, c_in, 3, 3, 3) stage weights into one
    (n_stages*3, c_out, 9*c_pad) operand: one (c_out, K) matrix per (stage, kd),
    with the K axis ordered (kh, kw)-major / channel-minor to match the planes
    buffer layout.  Channel columns beyond c_in are zero."""
    ws, bs = [], []
    for w, b in params:
        c_out, c_in_s = w.shape[0], w.shape[1]
        wt = jnp.transpose(w, (2, 0, 3, 4, 1))            # (kd, c_out, kh, kw, c_in)
        wt = jnp.pad(wt, ((0, 0),) * 4 + ((0, c_pad - c_in_s),))
        ws.append(wt.reshape(3, c_out, 9 * c_pad))
        bs.append(b.reshape(c_out, 1))
    w_all = jnp.concatenate(ws, axis=0).astype(patch_dtype)   # (S*3, c_out, K)
    b_all = jnp.stack(bs).astype(jnp.float32)                  # (S, c_out, 1)
    return w_all, b_all


def _padded_tile_bytes(shape, dtype):
    """Bytes of one VMEM tile after (8, 128) padding of the trailing dims."""
    shape = list(shape)
    itemsize = jnp.dtype(dtype).itemsize
    if len(shape) >= 2:
        shape[-2] = _round_up(shape[-2], 8)
    shape[-1] = _round_up(shape[-1], 128)
    n = 1
    for d in shape:
        n *= d
    return n * itemsize


def _make_fused_kernel(n_stages, c_in, c_out, c_pad, D, H, W,
                       marg_a, marg_p, patch_dtype):
    P = D * H * W
    HW = H * W
    KP = 9 * c_pad          # matmul K (sublane aligned since c_pad % 8 == 0)

    def kernel(x_ref, w_ref, b_ref, mask_ref, o_ref, act, planes):
        f32 = jnp.float32

        # --- Per-step init: only margins + unused channel rows (interiors are
        #     fully overwritten every stage).  Must run every step: under
        #     megacore "parallel" each core has its own scratch copy.
        act[:, 0:marg_a] = jnp.zeros((c_pad, marg_a), f32)
        act[:, marg_a + P:marg_a + P + marg_a] = jnp.zeros((c_pad, marg_a), f32)
        if c_pad > c_in:
            act[c_in:c_pad, marg_a:marg_a + P] = jnp.zeros((c_pad - c_in, P), f32)
        planes[:, 0:marg_p] = jnp.zeros((KP, marg_p), patch_dtype)
        planes[:, marg_p + P:marg_p + P + marg_p] = jnp.zeros((KP, marg_p),
                                                              patch_dtype)

        # Load this batch element: channels on sublanes, D*H*W on lanes.
        act[0:c_in, marg_a:marg_a + P] = x_ref[0].astype(f32)

        for s in range(n_stages):
            # im2col: 9 (kh, kw) lane-shifted, h/w-masked planes.  The kd shift
            # is folded into the matmul below via +-H*W lane offsets into the
            # zero-margined planes buffer.
            for kh in range(3):
                for kw in range(3):
                    t = kh * 3 + kw
                    start = marg_a + (kh - 1) * W + (kw - 1)
                    shifted = act[:, start:start + P]              # (c_pad, P)
                    if kh == 1 and kw == 1:
                        val = shifted                              # all-ones mask
                    else:
                        val = shifted * mask_ref[t:t + 1, :]
                    planes[t * c_pad:(t + 1) * c_pad, marg_p:marg_p + P] = (
                        val.astype(patch_dtype))

            # 3 MXU dots with K = 9*c_pad (f32 accumulate); kd handled by the
            # lane offsets (out-of-volume depth taps land in the zero margins).
            # Bias + ReLU fused in the epilogue.
            y = jnp.dot(w_ref[3 * s + 0],
                        planes[:, marg_p - HW:marg_p - HW + P],
                        preferred_element_type=f32)
            y = y + jnp.dot(w_ref[3 * s + 1],
                            planes[:, marg_p:marg_p + P],
                            preferred_element_type=f32)
            y = y + jnp.dot(w_ref[3 * s + 2],
                            planes[:, marg_p + HW:marg_p + HW + P],
                            preferred_element_type=f32)
            y = jnp.maximum(y + b_ref[s], 0.0)                     # (c_out, P)

            if s == n_stages - 1:
                o_ref[0] = y.astype(o_ref.dtype)                   # lane-dense store
            else:
                act[0:c_out, marg_a:marg_a + P] = y                # in-place update
                if c_out < c_in:                                   # stale x rows
                    act[c_out:c_in, marg_a:marg_a + P] = jnp.zeros(
                        (c_in - c_out, P), f32)

    return kernel


def conv_block_forward(x_ncdhw, params, patch_dtype=jnp.float32):
    """ConvBlock.forward (normalization='none'): n_stages x (Conv3d k=3 pad=1 -> ReLU).

    patch_dtype=jnp.bfloat16 halves im2col traffic / runs the MXU at native
    bf16 rate on v6e/v7x (keep f32 on v5e; loosen the numerical tolerance)."""
    N, c_in, D, H, W = x_ncdhw.shape
    n_stages = len(params)
    c_out = params[0][0].shape[0]
    c_pad = _round_up(max(c_in, c_out), 8)        # sublane-aligned channel rows
    P = D * H * W
    HW = H * W
    marg_a = _round_up(W + 1, 128)                # halo for the h/w lane shifts
    marg_p = _round_up(max(HW, 128), 128)         # >= H*W so kd offsets hit zeros
    K = 9 * c_pad
    assert marg_p >= HW and marg_a >= W + 1

    # Lane-dense HBM views: (N, C, D*H*W) is a pure reshape of NCDHW.
    x2 = x_ncdhw.reshape(N, c_in, P)
    w_all, b_all = _pack_params(params, c_pad, patch_dtype)  # (S*3,c_out,K),(S,c_out,1)
    masks = _make_hw_masks(D, H, W)                          # (9, P)

    kernel = _make_fused_kernel(n_stages, c_in, c_out, c_pad, D, H, W,
                                marg_a, marg_p, patch_dtype)

    # VMEM limit derived from the actual per-step working set (pipeline blocks
    # double-buffered, scratch single-buffered), with 2x headroom.
    working = (2 * _padded_tile_bytes((1, c_in, P), x2.dtype)
               + 2 * _padded_tile_bytes((n_stages * 3, c_out, K), w_all.dtype)
               + 2 * _padded_tile_bytes((n_stages, c_out, 1), b_all.dtype)
               + 2 * _padded_tile_bytes((9, P), masks.dtype)
               + 2 * _padded_tile_bytes((1, c_out, P), x_ncdhw.dtype)
               + _padded_tile_bytes((c_pad, marg_a + P + marg_a), jnp.float32)
               + _padded_tile_bytes((K, marg_p + P + marg_p), patch_dtype))
    vmem_limit = int(min(100 * 1024 * 1024, max(8 * 1024 * 1024, 2 * working)))

    out2 = pl.pallas_call(
        kernel,
        out_shape=jax.ShapeDtypeStruct((N, c_out, P), x_ncdhw.dtype),
        grid_spec=pltpu.PrefetchScalarGridSpec(
            num_scalar_prefetch=0,
            grid=(N,),
            in_specs=[
                pl.BlockSpec((1, c_in, P), lambda n: (n, 0, 0)),
                # Grid-invariant operands (constant index_map) stay resident.
                # TODO(synk): pipeline_mode=pl.Buffered(1) here once c_out>=128
                #   makes their default double-buffer a real share of VMEM.
                pl.BlockSpec((n_stages * 3, c_out, K), lambda n: (0, 0, 0)),
                pl.BlockSpec((n_stages, c_out, 1), lambda n: (0, 0, 0)),
                pl.BlockSpec((9, P), lambda n: (0, 0)),
            ],
            out_specs=pl.BlockSpec((1, c_out, P), lambda n: (n, 0, 0)),
            scratch_shapes=[
                pltpu.VMEM((c_pad, marg_a + P + marg_a), jnp.float32),  # activations
                pltpu.VMEM((K, marg_p + P + marg_p), patch_dtype),      # 9-plane im2col
            ],
        ),
        compiler_params=pltpu.CompilerParams(
            dimension_semantics=("parallel",),    # >=2 blocks feed both v7x TCs
            vmem_limit_bytes=vmem_limit,
        ),
    )(x2, w_all, b_all, masks)

    return out2.reshape(N, c_out, D, H, W)


def init_conv_block_params(key, n_stages, n_filters_in, n_filters_out):
    """Deterministic synthetic parameters with nn.Conv3d(in, out, 3) shapes
    (PyTorch OIDHW layout) and matching uniform init bounds."""
    params = []
    cin = n_filters_in
    for _ in range(n_stages):
        key, kw_, kb_ = jax.random.split(key, 3)
        bound = 1.0 / float(np.sqrt(cin * 27))
        w = jax.random.uniform(kw_, (n_filters_out, cin, 3, 3, 3),
                               jnp.float32, -bound, bound)
        b = jax.random.uniform(kb_, (n_filters_out,), jnp.float32, -bound, bound)
        params.append((w, b))
        cin = n_filters_out
    return params


def _reference_forward(x_ncdhw, params):
    """Pure-JAX reference (lax conv, NCDHW/OIDHW) for the correctness check."""
    x = x_ncdhw
    for w, b in params:
        y = lax.conv_general_dilated(
            x, w, window_strides=(1, 1, 1), padding="SAME",
            dimension_numbers=("NCDHW", "OIDHW", "NCDHW"))
        x = jnp.maximum(y + b[None, :, None, None, None], 0.0)
    return x


if __name__ == "__main__":
    # ConvBlock(n_stages=2, n_filters_in=4, n_filters_out=8, normalization='none')
    n_stages, c_in, c_out = 2, 4, 8
    N, D, H, W = 2, 8, 8, 8

    key = jax.random.PRNGKey(0)
    key, kx = jax.random.split(key)
    x = jax.random.normal(kx, (N, c_in, D, H, W), jnp.float32)   # NCDHW like torch

    params = init_conv_block_params(key, n_stages, c_in, c_out)

    out = jax.block_until_ready(conv_block_forward(x, params))
    ref = jax.block_until_ready(_reference_forward(x, params))

    assert out.shape == (N, c_out, D, H, W)
    assert jnp.allclose(out, ref, atol=2e-4, rtol=2e-4), "mismatch vs lax reference"

    print("KERNEL_OK")
</pallas_src>

<mosaic_0001>
module attributes {stable_mosaic.version = 11 : i64} {
  func.func @kernel(%arg0: i32, %arg1: memref<1x4x512xf32, #tpu.memory_space<vmem>>, %arg2: memref<6x8x72xf32, #tpu.memory_space<vmem>>, %arg3: memref<2x8x1xf32, #tpu.memory_space<vmem>>, %arg4: memref<9x512xf32, #tpu.memory_space<vmem>>, %arg5: memref<1x8x512xf32, #tpu.memory_space<vmem>>, %arg6: memref<8x768xf32, #tpu.memory_space<vmem>>, %arg7: memref<72x768xf32, #tpu.memory_space<vmem>>) attributes {dimension_semantics = [#tpu.dimension_semantics<parallel>], iteration_bounds = array<i64: 2>, scalar_prefetch = 0 : i64, scratch_operands = 2 : i64, tpu.core_type = #tpu.core_type<tc>, window_params = [{transform_indices = @transform_0, window_bounds = array<i64: 1, 4, 512>}, {pipeline_mode = #tpu.pipeline_mode<synchronous>, transform_indices = @transform_1, window_bounds = array<i64: 6, 8, 72>}, {pipeline_mode = #tpu.pipeline_mode<synchronous>, transform_indices = @transform_2, window_bounds = array<i64: 2, 8, 1>}, {pipeline_mode = #tpu.pipeline_mode<synchronous>, transform_indices = @transform_3, window_bounds = array<i64: 9, 512>}, {transform_indices = @transform_4, window_bounds = array<i64: 1, 8, 512>}]} {
    %cst = arith.constant 0.000000e+00 : f32
    %0 = vector.broadcast %cst : f32 to vector<8x128xf32>
    %c0 = arith.constant 0 : index
    %c0_0 = arith.constant 0 : index
    %1 = vector.load %arg6[%c0, %c0_0] : memref<8x768xf32, #tpu.memory_space<vmem>>, vector<8x128xf32>
    tpu.vector_store %arg6[%c0, %c0_0], %0 {strides = array<i32>} : memref<8x768xf32, #tpu.memory_space<vmem>>, vector<8x128xf32>,
    %cst_1 = arith.constant 0.000000e+00 : f32
    %2 = vector.broadcast %cst_1 : f32 to vector<8x128xf32>
    %c0_2 = arith.constant 0 : index
    %c640 = arith.constant 640 : index
    %3 = vector.load %arg6[%c0_2, %c640] : memref<8x768xf32, #tpu.memory_space<vmem>>, vector<8x128xf32>
    tpu.vector_store %arg6[%c0_2, %c640], %2 {strides = array<i32>} : memref<8x768xf32, #tpu.memory_space<vmem>>, vector<8x128xf32>,
    %cst_3 = arith.constant 0.000000e+00 : f32
    %4 = vector.broadcast %cst_3 : f32 to vector<4x512xf32>
    %c4 = arith.constant 4 : index
    %c128 = arith.constant 128 : index
    %5 = vector.load %arg6[%c4, %c128] : memref<8x768xf32, #tpu.memory_space<vmem>>, vector<4x512xf32>
    tpu.vector_store %arg6[%c4, %c128], %4 {strides = array<i32>} : memref<8x768xf32, #tpu.memory_space<vmem>>, vector<4x512xf32>,
    %cst_4 = arith.constant 0.000000e+00 : f32
    %6 = vector.broadcast %cst_4 : f32 to vector<72x128xf32>
    %c0_5 = arith.constant 0 : index
    %c0_6 = arith.constant 0 : index
    %7 = vector.load %arg7[%c0_5, %c0_6] : memref<72x768xf32, #tpu.memory_space<vmem>>, vector<72x128xf32>
    tpu.vector_store %arg7[%c0_5, %c0_6], %6 {strides = array<i32>} : memref<72x768xf32, #tpu.memory_space<vmem>>, vector<72x128xf32>,
    %cst_7 = arith.constant 0.000000e+00 : f32
    %8 = vector.broadcast %cst_7 : f32 to vector<72x128xf32>
    %c0_8 = arith.constant 0 : index
    %c640_9 = arith.constant 640 : index
    %9 = vector.load %arg7[%c0_8, %c640_9] : memref<72x768xf32, #tpu.memory_space<vmem>>, vector<72x128xf32>
    tpu.vector_store %arg7[%c0_8, %c640_9], %8 {strides = array<i32>} : memref<72x768xf32, #tpu.memory_space<vmem>>, vector<72x128xf32>,
    %c0_10 = arith.constant 0 : index
    %c0_11 = arith.constant 0 : index
    %c0_12 = arith.constant 0 : index
    %10 = vector.load %arg1[%c0_10, %c0_11, %c0_12] : memref<1x4x512xf32, #tpu.memory_space<vmem>>, vector<1x4x512xf32>
    %11 = vector.shape_cast %10 : vector<1x4x512xf32> to vector<4x512xf32>
    %c0_13 = arith.constant 0 : index
    %c128_14 = arith.constant 128 : index
    %12 = vector.load %arg6[%c0_13, %c128_14] : memref<8x768xf32, #tpu.memory_space<vmem>>, vector<4x512xf32>
    tpu.vector_store %arg6[%c0_13, %c128_14], %11 {strides = array<i32>} : memref<8x768xf32, #tpu.memory_space<vmem>>, vector<4x512xf32>,
    %c0_15 = arith.constant 0 : index
    %c119 = arith.constant 119 : index
    %13 = vector.load %arg6[%c0_15, %c119] : memref<8x768xf32, #tpu.memory_space<vmem>>, vector<8x512xf32>
    %c0_16 = arith.constant 0 : index
    %c0_17 = arith.constant 0 : index
    %14 = vector.load %arg4[%c0_16, %c0_17] : memref<9x512xf32, #tpu.memory_space<vmem>>, vector<1x512xf32>
    %15 = vector.broadcast %14 : vector<1x512xf32> to vector<8x512xf32>
    %16 = arith.mulf %13, %15 : vector<8x512xf32>
    %c0_18 = arith.constant 0 : index
    %c128_19 = arith.constant 128 : index
    %17 = vector.load %arg7[%c0_18, %c128_19] : memref<72x768xf32, #tpu.memory_space<vmem>>, vector<8x512xf32>
    tpu.vector_store %arg7[%c0_18, %c128_19], %16 {strides = array<i32>} : memref<72x768xf32, #tpu.memory_space<vmem>>, vector<8x512xf32>,
    %c0_20 = arith.constant 0 : index
    %c120 = arith.constant 120 : index
    %18 = vector.load %arg6[%c0_20, %c120] : memref<8x768xf32, #tpu.memory_space<vmem>>, vector<8x512xf32>
    %c1 = arith.constant 1 : index
    %c0_21 = arith.constant 0 : index
    %19 = vector.load %arg4[%c1, %c0_21] : memref<9x512xf32, #tpu.memory_space<vmem>>, vector<1x512xf32>
    %20 = vector.broadcast %19 : vector<1x512xf32> to vector<8x512xf32>
    %21 = arith.mulf %18, %20 : vector<8x512xf32>
    %c8 = arith.constant 8 : index
    %c128_22 = arith.constant 128 : index
    %22 = vector.load %arg7[%c8, %c128_22] : memref<72x768xf32, #tpu.memory_space<vmem>>, vector<8x512xf32>
    tpu.vector_store %arg7[%c8, %c128_22], %21 {strides = array<i32>} : memref<72x768xf32, #tpu.memory_space<vmem>>, vector<8x512xf32>,
    %c0_23 = arith.constant 0 : index
    %c121 = arith.constant 121 : index
    %23 = vector.load %arg6[%c0_23, %c121] : memref<8x768xf32, #tpu.memory_space<vmem>>, vector<8x512xf32>
    %c2 = arith.constant 2 : index
    %c0_24 = arith.constant 0 : index
    %24 = vector.load %arg4[%c2, %c0_24] : memref<9x512xf32, #tpu.memory_space<vmem>>, vector<1x512xf32>
    %25 = vector.broadcast %24 : vector<1x512xf32> to vector<8x512xf32>
    %26 = arith.mulf %23, %25 : vector<8x512xf32>
    %c16 = arith.constant 16 : index
    %c128_25 = arith.constant 128 : index
    %27 = vector.load %arg7[%c16, %c128_25] : memref<72x768xf32, #tpu.memory_space<vmem>>, vector<8x512xf32>
    tpu.vector_store %arg7[%c16, %c128_25], %26 {strides = array<i32>} : memref<72x768xf32, #tpu.memory_space<vmem>>, vector<8x512xf32>,
    %c0_26 = arith.constant 0 : index
    %c127 = arith.constant 127 : index
    %28 = vector.load %arg6[%c0_26, %c127] : memref<8x768xf32, #tpu.memory_space<vmem>>, vector<8x512xf32>
    %c3 = arith.constant 3 : index
    %c0_27 = arith.constant 0 : index
    %29 = vector.load %arg4[%c3, %c0_27] : memref<9x512xf32, #tpu.memory_space<vmem>>, vector<1x512xf32>
    %30 = vector.broadcast %29 : vector<1x512xf32> to vector<8x512xf32>
    %31 = arith.mulf %28, %30 : vector<8x512xf32>
    %c24 = arith.constant 24 : index
    %c128_28 = arith.constant 128 : index
    %32 = vector.load %arg7[%c24, %c128_28] : memref<72x768xf32, #tpu.memory_space<vmem>>, vector<8x512xf32>
    tpu.vector_store %arg7[%c24, %c128_28], %31 {strides = array<i32>} : memref<72x768xf32, #tpu.memory_space<vmem>>, vector<8x512xf32>,
    %c0_29 = arith.constant 0 : index
    %c128_30 = arith.constant 128 : index
    %33 = vector.load %arg6[%c0_29, %c128_30] : memref<8x768xf32, #tpu.memory_space<vmem>>, vector<8x512xf32>
    %c32 = arith.constant 32 : index
    %c128_31 = arith.constant 128 : index
    %34 = vector.load %arg7[%c32, %c128_31] : memref<72x768xf32, #tpu.memory_space<vmem>>, vector<8x512xf32>
    tpu.vector_store %arg7[%c32, %c128_31], %33 {strides = array<i32>} : memref<72x768xf32, #tpu.memory_space<vmem>>, vector<8x512xf32>,
    %c0_32 = arith.constant 0 : index
    %c129 = arith.constant 129 : index
    %35 = vector.load %arg6[%c0_32, %c129] : memref<8x768xf32, #tpu.memory_space<vmem>>, vector<8x512xf32>
    %c5 = arith.constant 5 : index
    %c0_33 = arith.constant 0 : index
    %36 = vector.load %arg4[%c5, %c0_33] : memref<9x512xf32, #tpu.memory_space<vmem>>, vector<1x512xf32>
    %37 = vector.broadcast %36 : vector<1x512xf32> to vector<8x512xf32>
    %38 = arith.mulf %35, %37 : vector<8x512xf32>
    %c40 = arith.constant 40 : index
    %c128_34 = arith.constant 128 : index
    %39 = vector.load %arg7[%c40, %c128_34] : memref<72x768xf32, #tpu.memory_space<vmem>>, vector<8x512xf32>
    tpu.vector_store %arg7[%c40, %c128_34], %38 {strides = array<i32>} : memref<72x768xf32, #tpu.memory_space<vmem>>, vector<8x512xf32>,
    %c0_35 = arith.constant 0 : index
    %c135 = arith.constant 135 : index
    %40 = vector.load %arg6[%c0_35, %c135] : memref<8x768xf32, #tpu.memory_space<vmem>>, vector<8x512xf32>
    %c6 = arith.constant 6 : index
    %c0_36 = arith.constant 0 : index
    %41 = vector.load %arg4[%c6, %c0_36] : memref<9x512xf32, #tpu.memory_space<vmem>>, vector<1x512xf32>
    %42 = vector.broadcast %41 : vector<1x512xf32> to vector<8x512xf32>
    %43 = arith.mulf %40, %42 : vector<8x512xf32>
    %c48 = arith.constant 48 : index
    %c128_37 = arith.constant 128 : index
    %44 = vector.load %arg7[%c48, %c128_37] : memref<72x768xf32, #tpu.memory_space<vmem>>, vector<8x512xf32>
    tpu.vector_store %arg7[%c48, %c128_37], %43 {strides = array<i32>} : memref<72x768xf32, #tpu.memory_space<vmem>>, vector<8x512xf32>,
    %c0_38 = arith.constant 0 : index
    %c136 = arith.constant 136 : index
    %45 = vector.load %arg6[%c0_38, %c136] : memref<8x768xf32, #tpu.memory_space<vmem>>, vector<8x512xf32>
    %c7 = arith.constant 7 : index
    %c0_39 = arith.constant 0 : index
    %46 = vector.load %arg4[%c7, %c0_39] : memref<9x512xf32, #tpu.memory_space<vmem>>, vector<1x512xf32>
    %47 = vector.broadcast %46 : vector<1x512xf32> to vector<8x512xf32>
    %48 = arith.mulf %45, %47 : vector<8x512xf32>
    %c56 = arith.constant 56 : index
    %c128_40 = arith.constant 128 : index
    %49 = vector.load %arg7[%c56, %c128_40] : memref<72x768xf32, #tpu.memory_space<vmem>>, vector<8x512xf32>
    tpu.vector_store %arg7[%c56, %c128_40], %48 {strides = array<i32>} : memref<72x768xf32, #tpu.memory_space<vmem>>, vector<8x512xf32>,
    %c0_41 = arith.constant 0 : index
    %c137 = arith.constant 137 : index
    %50 = vector.load %arg6[%c0_41, %c137] : memref<8x768xf32, #tpu.memory_space<vmem>>, vector<8x512xf32>
    %c8_42 = arith.constant 8 : index
    %c0_43 = arith.constant 0 : index
    %51 = vector.load %arg4[%c8_42, %c0_43] : memref<9x512xf32, #tpu.memory_space<vmem>>, vector<1x512xf32>
    %52 = vector.broadcast %51 : vector<1x512xf32> to vector<8x512xf32>
    %53 = arith.mulf %50, %52 : vector<8x512xf32>
    %c64 = arith.constant 64 : index
    %c128_44 = arith.constant 128 : index
    %54 = vector.load %arg7[%c64, %c128_44] : memref<72x768xf32, #tpu.memory_space<vmem>>, vector<8x512xf32>
    tpu.vector_store %arg7[%c64, %c128_44], %53 {strides = array<i32>} : memref<72x768xf32, #tpu.memory_space<vmem>>, vector<8x512xf32>,
    %c0_45 = arith.constant 0 : index
    %c0_46 = arith.constant 0 : index
    %c0_47 = arith.constant 0 : index
    %55 = vector.load %arg2[%c0_45, %c0_46, %c0_47] : memref<6x8x72xf32, #tpu.memory_space<vmem>>, vector<1x8x72xf32>
    %56 = vector.shape_cast %55 : vector<1x8x72xf32> to vector<8x72xf32>
    %c0_48 = arith.constant 0 : index
    %c64_49 = arith.constant 64 : index
    %57 = vector.load %arg7[%c0_48, %c64_49] : memref<72x768xf32, #tpu.memory_space<vmem>>, vector<72x512xf32>
    %cst_50 = arith.constant dense<0.000000e+00> : vector<8x512xf32>
    %58 = tpu.matmul %56, %57, %cst_50 {dimension_numbers = #tpu.dot_dimension_numbers<[1], [0], [0], [1], [0, 0, 1, 1], [], []>} : vector<8x72xf32>, vector<72x512xf32>, vector<8x512xf32> -> vector<8x512xf32>
    %c1_51 = arith.constant 1 : index
    %c0_52 = arith.constant 0 : index
    %c0_53 = arith.constant 0 : index
    %59 = vector.load %arg2[%c1_51, %c0_52, %c0_53] : memref<6x8x72xf32, #tpu.memory_space<vmem>>, vector<1x8x72xf32>
    %60 = vector.shape_cast %59 : vector<1x8x72xf32> to vector<8x72xf32>
    %c0_54 = arith.constant 0 : index
    %c128_55 = arith.constant 128 : index
    %61 = vector.load %arg7[%c0_54, %c128_55] : memref<72x768xf32, #tpu.memory_space<vmem>>, vector<72x512xf32>
    %cst_56 = arith.constant dense<0.000000e+00> : vector<8x512xf32>
    %62 = tpu.matmul %60, %61, %cst_56 {dimension_numbers = #tpu.dot_dimension_numbers<[1], [0], [0], [1], [0, 0, 1, 1], [], []>} : vector<8x72xf32>, vector<72x512xf32>, vector<8x512xf32> -> vector<8x512xf32>
    %63 = arith.addf %58, %62 : vector<8x512xf32>
    %c2_57 = arith.constant 2 : index
    %c0_58 = arith.constant 0 : index
    %c0_59 = arith.constant 0 : index
    %64 = vector.load %arg2[%c2_57, %c0_58, %c0_59] : memref<6x8x72xf32, #tpu.memory_space<vmem>>, vector<1x8x72xf32>
    %65 = vector.shape_cast %64 : vector<1x8x72xf32> to vector<8x72xf32>
    %c0_60 = arith.constant 0 : index
    %c192 = arith.constant 192 : index
    %66 = vector.load %arg7[%c0_60, %c192] : memref<72x768xf32, #tpu.memory_space<vmem>>, vector<72x512xf32>
    %cst_61 = arith.constant dense<0.000000e+00> : vector<8x512xf32>
    %67 = tpu.matmul %65, %66, %cst_61 {dimension_numbers = #tpu.dot_dimension_numbers<[1], [0], [0], [1], [0, 0, 1, 1], [], []>} : vector<8x72xf32>, vector<72x512xf32>, vector<8x512xf32> -> vector<8x512xf32>
    %68 = arith.addf %63, %67 : vector<8x512xf32>
    %c0_62 = arith.constant 0 : index
    %c0_63 = arith.constant 0 : index
    %c0_64 = arith.constant 0 : index
    %69 = vector.load %arg3[%c0_62, %c0_63, %c0_64] : memref<2x8x1xf32, #tpu.memory_space<vmem>>, vector<1x8x1xf32>
    %70 = vector.shape_cast %69 : vector<1x8x1xf32> to vector<8x1xf32>
    %71 = vector.broadcast %70 : vector<8x1xf32> to vector<8x512xf32>
    %72 = arith.addf %68, %71 : vector<8x512xf32>
    %cst_65 = arith.constant 0.000000e+00 : f32
    %73 = vector.broadcast %cst_65 : f32 to vector<8x512xf32>
    %74 = arith.maximumf %72, %73 : vector<8x512xf32>
    %c0_66 = arith.constant 0 : index
    %c128_67 = arith.constant 128 : index
    %75 = vector.load %arg6[%c0_66, %c128_67] : memref<8x768xf32, #tpu.memory_space<vmem>>, vector<8x512xf32>
    tpu.vector_store %arg6[%c0_66, %c128_67], %74 {strides = array<i32>} : memref<8x768xf32, #tpu.memory_space<vmem>>, vector<8x512xf32>,
    %c0_68 = arith.constant 0 : index
    %c119_69 = arith.constant 119 : index
    %76 = vector.load %arg6[%c0_68, %c119_69] : memref<8x768xf32, #tpu.memory_space<vmem>>, vector<8x512xf32>
    %c0_70 = arith.constant 0 : index
    %c0_71 = arith.constant 0 : index
    %77 = vector.load %arg4[%c0_70, %c0_71] : memref<9x512xf32, #tpu.memory_space<vmem>>, vector<1x512xf32>
    %78 = vector.broadcast %77 : vector<1x512xf32> to vector<8x512xf32>
    %79 = arith.mulf %76, %78 : vector<8x512xf32>
    %c0_72 = arith.constant 0 : index
    %c128_73 = arith.constant 128 : index
    %80 = vector.load %arg7[%c0_72, %c128_73] : memref<72x768xf32, #tpu.memory_space<vmem>>, vector<8x512xf32>
    tpu.vector_store %arg7[%c0_72, %c128_73], %79 {strides = array<i32>} : memref<72x768xf32, #tpu.memory_space<vmem>>, vector<8x512xf32>,
    %c0_74 = arith.constant 0 : index
    %c120_75 = arith.constant 120 : index
    %81 = vector.load %arg6[%c0_74, %c120_75] : memref<8x768xf32, #tpu.memory_space<vmem>>, vector<8x512xf32>
    %c1_76 = arith.constant 1 : index
    %c0_77 = arith.constant 0 : index
    %82 = vector.load %arg4[%c1_76, %c0_77] : memref<9x512xf32, #tpu.memory_space<vmem>>, vector<1x512xf32>
    %83 = vector.broadcast %82 : vector<1x512xf32> to vector<8x512xf32>
    %84 = arith.mulf %81, %83 : vector<8x512xf32>
    %c8_78 = arith.constant 8 : index
    %c128_79 = arith.constant 128 : index
    %85 = vector.load %arg7[%c8_78, %c128_79] : memref<72x768xf32, #tpu.memory_space<vmem>>, vector<8x512xf32>
    tpu.vector_store %arg7[%c8_78, %c128_79], %84 {strides = array<i32>} : memref<72x768xf32, #tpu.memory_space<vmem>>, vector<8x512xf32>,
    %c0_80 = arith.constant 0 : index
    %c121_81 = arith.constant 121 : index
    %86 = vector.load %arg6[%c0_80, %c121_81] : memref<8x768xf32, #tpu.memory_space<vmem>>, vector<8x512xf32>
    %c2_82 = arith.constant 2 : index
    %c0_83 = arith.constant 0 : index
    %87 = vector.load %arg4[%c2_82, %c0_83] : memref<9x512xf32, #tpu.memory_space<vmem>>, vector<1x512xf32>
    %88 = vector.broadcast %87 : vector<1x512xf32> to vector<8x512xf32>
    %89 = arith.mulf %86, %88 : vector<8x512xf32>
    %c16_84 = arith.constant 16 : index
    %c128_85 = arith.constant 128 : index
    %90 = vector.load %arg7[%c16_84, %c128_85] : memref<72x768xf32, #tpu.memory_space<vmem>>, vector<8x512xf32>
    tpu.vector_store %arg7[%c16_84, %c128_85], %89 {strides = array<i32>} : memref<72x768xf32, #tpu.memory_space<vmem>>, vector<8x512xf32>,
    %c0_86 = arith.constant 0 : index
    %c127_87 = arith.constant 127 : index
    %91 = vector.load %arg6[%c0_86, %c127_87] : memref<8x768xf32, #tpu.memory_space<vmem>>, vector<8x512xf32>
    %c3_88 = arith.constant 3 : index
    %c0_89 = arith.constant 0 : index
    %92 = vector.load %arg4[%c3_88, %c0_89] : memref<9x512xf32, #tpu.memory_space<vmem>>, vector<1x512xf32>
    %93 = vector.broadcast %92 : vector<1x512xf32> to vector<8x512xf32>
    %94 = arith.mulf %91, %93 : vector<8x512xf32>
    %c24_90 = arith.constant 24 : index
    %c128_91 = arith.constant 128 : index
    %95 = vector.load %arg7[%c24_90, %c128_91] : memref<72x768xf32, #tpu.memory_space<vmem>>, vector<8x512xf32>
    tpu.vector_store %arg7[%c24_90, %c128_91], %94 {strides = array<i32>} : memref<72x768xf32, #tpu.memory_space<vmem>>, vector<8x512xf32>,
    %c0_92 = arith.constant 0 : index
    %c128_93 = arith.constant 128 : index
    %96 = vector.load %arg6[%c0_92, %c128_93] : memref<8x768xf32, #tpu.memory_space<vmem>>, vector<8x512xf32>
    %c32_94 = arith.constant 32 : index
    %c128_95 = arith.constant 128 : index
    %97 = vector.load %arg7[%c32_94, %c128_95] : memref<72x768xf32, #tpu.memory_space<vmem>>, vector<8x512xf32>
    tpu.vector_store %arg7[%c32_94, %c128_95], %96 {strides = array<i32>} : memref<72x768xf32, #tpu.memory_space<vmem>>, vector<8x512xf32>,
    %c0_96 = arith.constant 0 : index
    %c129_97 = arith.constant 129 : index
    %98 = vector.load %arg6[%c0_96, %c129_97] : memref<8x768xf32, #tpu.memory_space<vmem>>, vector<8x512xf32>
    %c5_98 = arith.constant 5 : index
    %c0_99 = arith.constant 0 : index
    %99 = vector.load %arg4[%c5_98, %c0_99] : memref<9x512xf32, #tpu.memory_space<vmem>>, vector<1x512xf32>
    %100 = vector.broadcast %99 : vector<1x512xf32> to vector<8x512xf32>
    %101 = arith.mulf %98, %100 : vector<8x512xf32>
    %c40_100 = arith.constant 40 : index
    %c128_101 = arith.constant 128 : index
    %102 = vector.load %arg7[%c40_100, %c128_101] : memref<72x768xf32, #tpu.memory_space<vmem>>, vector<8x512xf32>
    tpu.vector_store %arg7[%c40_100, %c128_101], %101 {strides = array<i32>} : memref<72x768xf32, #tpu.memory_space<vmem>>, vector<8x512xf32>,
    %c0_102 = arith.constant 0 : index
    %c135_103 = arith.constant 135 : index
    %103 = vector.load %arg6[%c0_102, %c135_103] : memref<8x768xf32, #tpu.memory_space<vmem>>, vector<8x512xf32>
    %c6_104 = arith.constant 6 : index
    %c0_105 = arith.constant 0 : index
    %104 = vector.load %arg4[%c6_104, %c0_105] : memref<9x512xf32, #tpu.memory_space<vmem>>, vector<1x512xf32>
    %105 = vector.broadcast %104 : vector<1x512xf32> to vector<8x512xf32>
    %106 = arith.mulf %103, %105 : vector<8x512xf32>
    %c48_106 = arith.constant 48 : index
    %c128_107 = arith.constant 128 : index
    %107 = vector.load %arg7[%c48_106, %c128_107] : memref<72x768xf32, #tpu.memory_space<vmem>>, vector<8x512xf32>
    tpu.vector_store %arg7[%c48_106, %c128_107], %106 {strides = array<i32>} : memref<72x768xf32, #tpu.memory_space<vmem>>, vector<8x512xf32>,
    %c0_108 = arith.constant 0 : index
    %c136_109 = arith.constant 136 : index
    %108 = vector.load %arg6[%c0_108, %c136_109] : memref<8x768xf32, #tpu.memory_space<vmem>>, vector<8x512xf32>
    %c7_110 = arith.constant 7 : index
    %c0_111 = arith.constant 0 : index
    %109 = vector.load %arg4[%c7_110, %c0_111] : memref<9x512xf32, #tpu.memory_space<vmem>>, vector<1x512xf32>
    %110 = vector.broadcast %109 : vector<1x512xf32> to vector<8x512xf32>
    %111 = arith.mulf %108, %110 : vector<8x512xf32>
    %c56_112 = arith.constant 56 : index
    %c128_113 = arith.constant 128 : index
    %112 = vector.load %arg7[%c56_112, %c128_113] : memref<72x768xf32, #tpu.memory_space<vmem>>, vector<8x512xf32>
    tpu.vector_store %arg7[%c56_112, %c128_113], %111 {strides = array<i32>} : memref<72x768xf32, #tpu.memory_space<vmem>>, vector<8x512xf32>,
    %c0_114 = arith.constant 0 : index
    %c137_115 = arith.constant 137 : index
    %113 = vector.load %arg6[%c0_114, %c137_115] : memref<8x768xf32, #tpu.memory_space<vmem>>, vector<8x512xf32>
    %c8_116 = arith.constant 8 : index
    %c0_117 = arith.constant 0 : index
    %114 = vector.load %arg4[%c8_116, %c0_117] : memref<9x512xf32, #tpu.memory_space<vmem>>, vector<1x512xf32>
    %115 = vector.broadcast %114 : vector<1x512xf32> to vector<8x512xf32>
    %116 = arith.mulf %113, %115 : vector<8x512xf32>
    %c64_118 = arith.constant 64 : index
    %c128_119 = arith.constant 128 : index
    %117 = vector.load %arg7[%c64_118, %c128_119] : memref<72x768xf32, #tpu.memory_space<vmem>>, vector<8x512xf32>
    tpu.vector_store %arg7[%c64_118, %c128_119], %116 {strides = array<i32>} : memref<72x768xf32, #tpu.memory_space<vmem>>, vector<8x512xf32>,
    %c3_120 = arith.constant 3 : index
    %c0_121 = arith.constant 0 : index
    %c0_122 = arith.constant 0 : index
    %118 = vector.load %arg2[%c3_120, %c0_121, %c0_122] : memref<6x8x72xf32, #tpu.memory_space<vmem>>, vector<1x8x72xf32>
    %119 = vector.shape_cast %118 : vector<1x8x72xf32> to vector<8x72xf32>
    %c0_123 = arith.constant 0 : index
    %c64_124 = arith.constant 64 : index
    %120 = vector.load %arg7[%c0_123, %c64_124] : memref<72x768xf32, #tpu.memory_space<vmem>>, vector<72x512xf32>
    %cst_125 = arith.constant dense<0.000000e+00> : vector<8x512xf32>
    %121 = tpu.matmul %119, %120, %cst_125 {dimension_numbers = #tpu.dot_dimension_numbers<[1], [0], [0], [1], [0, 0, 1, 1], [], []>} : vector<8x72xf32>, vector<72x512xf32>, vector<8x512xf32> -> vector<8x512xf32>
    %c4_126 = arith.constant 4 : index
    %c0_127 = arith.constant 0 : index
    %c0_128 = arith.constant 0 : index
    %122 = vector.load %arg2[%c4_126, %c0_127, %c0_128] : memref<6x8x72xf32, #tpu.memory_space<vmem>>, vector<1x8x72xf32>
    %123 = vector.shape_cast %122 : vector<1x8x72xf32> to vector<8x72xf32>
    %c0_129 = arith.constant 0 : index
    %c128_130 = arith.constant 128 : index
    %124 = vector.load %arg7[%c0_129, %c128_130] : memref<72x768xf32, #tpu.memory_space<vmem>>, vector<72x512xf32>
    %cst_131 = arith.constant dense<0.000000e+00> : vector<8x512xf32>
    %125 = tpu.matmul %123, %124, %cst_131 {dimension_numbers = #tpu.dot_dimension_numbers<[1], [0], [0], [1], [0, 0, 1, 1], [], []>} : vector<8x72xf32>, vector<72x512xf32>, vector<8x512xf32> -> vector<8x512xf32>
    %126 = arith.addf %121, %125 : vector<8x512xf32>
    %c5_132 = arith.constant 5 : index
    %c0_133 = arith.constant 0 : index
    %c0_134 = arith.constant 0 : index
    %127 = vector.load %arg2[%c5_132, %c0_133, %c0_134] : memref<6x8x72xf32, #tpu.memory_space<vmem>>, vector<1x8x72xf32>
    %128 = vector.shape_cast %127 : vector<1x8x72xf32> to vector<8x72xf32>
    %c0_135 = arith.constant 0 : index
    %c192_136 = arith.constant 192 : index
    %129 = vector.load %arg7[%c0_135, %c192_136] : memref<72x768xf32, #tpu.memory_space<vmem>>, vector<72x512xf32>
    %cst_137 = arith.constant dense<0.000000e+00> : vector<8x512xf32>
    %130 = tpu.matmul %128, %129, %cst_137 {dimension_numbers = #tpu.dot_dimension_numbers<[1], [0], [0], [1], [0, 0, 1, 1], [], []>} : vector<8x72xf32>, vector<72x512xf32>, vector<8x512xf32> -> vector<8x512xf32>
    %131 = arith.addf %126, %130 : vector<8x512xf32>
    %c1_138 = arith.constant 1 : index
    %c0_139 = arith.constant 0 : index
    %c0_140 = arith.constant 0 : index
    %132 = vector.load %arg3[%c1_138, %c0_139, %c0_140] : memref<2x8x1xf32, #tpu.memory_space<vmem>>, vector<1x8x1xf32>
    %133 = vector.shape_cast %132 : vector<1x8x1xf32> to vector<8x1xf32>
    %134 = vector.broadcast %133 : vector<8x1xf32> to vector<8x512xf32>
    %135 = arith.addf %131, %134 : vector<8x512xf32>
    %cst_141 = arith.constant 0.000000e+00 : f32
    %136 = vector.broadcast %cst_141 : f32 to vector<8x512xf32>
    %137 = arith.maximumf %135, %136 : vector<8x512xf32>
    %c0_142 = arith.constant 0 : index
    %c0_143 = arith.constant 0 : index
    %c0_144 = arith.constant 0 : index
    %138 = vector.load %arg5[%c0_142, %c0_143, %c0_144] : memref<1x8x512xf32, #tpu.memory_space<vmem>>, vector<1x8x512xf32>
    %139 = vector.shape_cast %138 : vector<1x8x512xf32> to vector<8x512xf32>
    %140 = vector.shape_cast %137 : vector<8x512xf32> to vector<1x8x512xf32>
    tpu.vector_store %arg5[%c0_142, %c0_143, %c0_144], %140 {strides = array<i32>} : memref<1x8x512xf32, #tpu.memory_space<vmem>>, vector<1x8x512xf32>,
    return
  }
  func.func @transform_0(%arg0: i32) -> (i32, i32, i32) {
    %c0_i32 = arith.constant 0 : i32
    %c0_i32_0 = arith.constant 0 : i32
    %c0_i32_1 = arith.constant 0 : i32
    return %arg0, %c0_i32, %c0_i32_0 : i32, i32, i32
  }
  func.func @transform_1(%arg0: i32) -> (i32, i32, i32) {
    %c0_i32 = arith.constant 0 : i32
    %c0_i32_0 = arith.constant 0 : i32
    %c0_i32_1 = arith.constant 0 : i32
    %c0_i32_2 = arith.constant 0 : i32
    return %c0_i32, %c0_i32_0, %c0_i32_1 : i32, i32, i32
  }
  func.func @transform_2(%arg0: i32) -> (i32, i32, i32) {
    %c0_i32 = arith.constant 0 : i32
    %c0_i32_0 = arith.constant 0 : i32
    %c0_i32_1 = arith.constant 0 : i32
    %c0_i32_2 = arith.constant 0 : i32
    return %c0_i32, %c0_i32_0, %c0_i32_1 : i32, i32, i32
  }
  func.func @transform_3(%arg0: i32) -> (i32, i32) {
    %c0_i32 = arith.constant 0 : i32
    %c0_i32_0 = arith.constant 0 : i32
    %c0_i32_1 = arith.constant 0 : i32
    return %c0_i32, %c0_i32_0 : i32, i32
  }
  func.func @transform_4(%arg0: i32) -> (i32, i32, i32) {
    %c0_i32 = arith.constant 0 : i32
    %c0_i32_0 = arith.constant 0 : i32
    %c0_i32_1 = arith.constant 0 : i32
    return %arg0, %c0_i32, %c0_i32_0 : i32, i32, i32
  }
}

</mosaic_0001>

<bundles_post_ra>
// kernel: tpu_custom_call.1
= control target key start
LH: loop header
LB: loop body
LE: loop exit
PB: predicated region body
PF: predicated region fallthrough
CT: control target
= control target key end

     0   :  { %9 = vsyncpa [#allocation5], 0  ;;  %s6036_s0 = inlined_call_operand.hbm [shape: f32[2,4,512], index: 0, kind: input, shape index: {}]   ;;  %s6037_s1 = inlined_call_operand.hbm [shape: f32[6,8,72], index: 1, kind: input, shape index: {}]   ;;  %s6038_s2 = inlined_call_operand.vmem [shape: f32[2,8,1], index: 2, kind: input, shape index: {}]   ;;  %s6039_s3 = inlined_call_operand.hbm [shape: f32[9,512], index: 3, kind: input, shape index: {}]   ;;  %s6040_s4 = inlined_call_operand.hbm [shape: f32[2,8,512], index: 4, kind: output, shape index: {}]  }
   0x1   :  { %11 = vsyncpa [#allocation5 + $0x1], 0 }
   0x2   :  { %12 = vsyncpa [#allocation8], 0 }
   0x3   :  { %13 = vsyncpa [#allocation6], 0 }
   0x4   :  { %15 = vsyncpa [#allocation6 + $0x1], 0  ;;  %s4556_s15 = smov 0   ;;  %s4558_s16 = smov 0  }
   0x5   :  { %s4560_s17 = smov 0   ;;  %s4562_s18 = smov 0  }
   0x6 LB: > { %s4577_s19 = sadd.s32 4294967295, %s4510_s18   ;;  %s3486_s20 = sadd.s32 4294967294, %s4510_s18   ;;  %s4510_s18 = sphi %s4562_s18, %s6060_s18   ;;  %s4506_s17 = sphi %s4560_s17, %s6059_s17   ;;  %s4502_s16 = sphi %s4558_s16, %s6058_s16   ;;  %s4498_s15 = sphi %s4556_s15, %s6057_s15  }
   0x7   : > { %p41_p0 = scmp.ne.s32.totalorder %s4502_s16, %s4498_s15  ;;  %p6041_p1 = scmp.eq.s32.totalorder %s4577_s19, 0 }
   0x8   : > { %p134_p3 = scmp.eq.s32.totalorder %s3486_s20, 1  ;;  %p3487_p5 = scmp.ge.s32.totalorder %s4510_s18, 1 }
   0x9   : > { %p4586_p4 = por %p6041_p1, %p41_p0  ;;  %p141_p7 = scmp.lt.s32.totalorder %s4510_s18, 3 }
   0xa   : > { %p4591_p6 = por %p134_p3, %p41_p0  ;;  %s4512_s24 = smov [#allocation7]  }
   0xb   : > { %s6044_s21 = scalar_select %p4586_p4, 1, 0 }
   0xc   : > { %s6045_s22 = scalar_select %p4591_p6, 1, 0 }
   0xd   : > { %p4596_p8 = pnand %p3487_p5, %p141_p7  ;;  %s153_s25 = sshll.u32 %s4512_s24, 4  ;;  %s4600_s25 = int_to_ptr.vmem [resolvable:$true] %s153_s25 }
   0xe   : > { %s4513_s27 = smov [#allocation9]   ;;  %s4354_s5 = scalar_lea.hbm %s6037_s1, 768 }
   0xf   : > { %p3739_p9 = pneg %p4596_p8  ;;  %s169_s28 = sshll.u32 %s4513_s27, 4  ;;  %s4611_s28 = int_to_ptr.vmem [resolvable:$true] %s169_s28 }
  0x10   : > { %p4355_p12 = scmp.ne.s32.totalorder %s6037_s1, %s4354_s5  ;;  %p4361_p5 = scmp.lt.u32.totalorder %s4354_s5, %s6037_s1 }
  0x11   : > { %p4607_p11 = pnand %p3739_p9, %p6041_p1 }
  0x13   : > { %p4356_p13 = pneg %p4607_p11 }
  0x15   : > { %p4357_p0 = pnand %p4356_p13, %p4355_p12 }
  0x17   : > { %p4358_p3 = pneg %p4357_p0 }
  0x19   : > { %p4363_p7 = pnand %p4361_p5, %p4358_p3 }
  0x1b   : > { %4366 = shalt.err (!%p4363_p7)
}
  0x1c   : > { %s4367_s10 = scalar_lea.vmem %s4600_s25, 768  ;;  %p4375_p2 = scmp.lt.s32.totalorder %s4600_s25, %s4600_s25 }
  0x1d   : > { %p4368_p9 = scmp.ne.s32.totalorder %s4600_s25, %s4367_s10  ;;  %p4376_p12 = scmp.lt.s32.totalorder %s4367_s10, %s4367_s10 }
  0x1f   : > { %p4370_p10 = pnand %p4368_p9, %p4356_p13  ;;  %p4377_p0 = por %p4376_p12, %p4375_p2 }
  0x21   : > { %p4371_p1 = pneg %p4370_p10 }
  0x23   : > { %p4378_p6 = pnand %p4377_p0, %p4371_p1 }
  0x25   : > { %4381 = shalt.err (!%p4378_p6)
}
  0x26   : > { %s4514_s11 = smov 128   ;;  %s4515_s12 = smov 8  }
  0x27   : > { %3742 = dma.hbm_to_vmem [thread:$0]  (!%p4607_p11), %s6037_s1, 768, %s4600_s25, [#allocation8], %s4514_s11, %s4514_s11, %s4515_s12  }
  0x28   : > { %s4382_s27 = scalar_lea.hbm %s6039_s3, 1024 }
  0x29   : > { %p4383_p2 = scmp.ne.s32.totalorder %s6039_s3, %s4382_s27  ;;  %p4389_p10 = scmp.lt.u32.totalorder %s4382_s27, %s6039_s3 }
  0x2b   : > { %p4385_p1 = pnand %p4383_p2, %p4356_p13 }
  0x2d   : > { %p4386_p6 = pneg %p4385_p1 }
  0x2f   : > { %p4391_p3 = pnand %p4389_p10, %p4386_p6 }
  0x31   : > { %4394 = shalt.err (!%p4391_p3)
}
  0x32   : > { %s4395_s25 = scalar_lea.vmem %s4611_s28, 1024  ;;  %p4403_p12 = scmp.lt.s32.totalorder %s4611_s28, %s4611_s28 }
  0x33   : > { %p4396_p5 = scmp.ne.s32.totalorder %s4611_s28, %s4395_s25  ;;  %p4404_p0 = scmp.lt.s32.totalorder %s4395_s25, %s4395_s25 }
  0x35   : > { %p4398_p7 = pnand %p4396_p5, %p4356_p13  ;;  %p4405_p2 = por %p4404_p0, %p4403_p12 }
  0x37   : > { %p4399_p9 = pneg %p4398_p7 }
  0x39   : > { %p4406_p1 = pnand %p4405_p2, %p4399_p9 }
  0x3b   : > { %4409 = shalt.err (!%p4406_p1)
}
  0x3c   : > { %s4516_s7 = smov 512   ;;  %s4517_s8 = smov 32  }
  0x3d   : > { %3745 = dma.hbm_to_vmem [thread:$0]  (!%p4607_p11), %s6039_s3, 1024, %s4611_s28, [#allocation8], %s4516_s7, %s4516_s7, %s4517_s8  }
  0x3e   : > { %s4666_s11 = sadd.s32 1, %s4510_s18   ;;  %s28_s13 = sadd.s32 1, %s4506_s17 }
  0x3f   : > { %s25_s12 = ssub.s32 %s4510_s18, %s4666_s11  ;;  %p35_p6 = scmp.ne.s32.totalorder %s4506_s17, %s4502_s16 }
  0x40   : > { %p26_p13 = scmp.eq.s32.totalorder %s25_s12, 0  ;;  %p36_p10 = scmp.eq.s32.totalorder %s4510_s18, 0 }
  0x41   : > { %p6048_p5 = scmp.eq.s32.totalorder %s4577_s19, 1  ;;  %p3756_p9 = scmp.lt.s32.totalorder %s4510_s18, 2 }
  0x42   : > { %s4675_s14 = scalar_select %p26_p13, %s4506_s17, %s28_s13  }
  0x43   : > { %p37_p3 = por %p36_p10, %p35_p6  ;;  %p4679_p7 = por %p6048_p5, %p35_p6 }
  0x44   : > { %s183_s26 = sand.u32 1, %s4506_s17   ;;  %s3517_s28 = sshll.u32 %s4510_s18, 8 }
  0x45   : > { %s6049_s20 = scalar_select %p4679_p7, 1, 0 }
  0x46   : > { %s3491_s24 = sshll.u32 %s183_s26, 4  ;;  %s4689_s30 = scalar_lea.hbm %s6036_s0, %s3517_s28 }
  0x47   : > { %s187_s5 = scalar_lea.vmem [#allocation4], %s3491_s24  ;;  %p4693_p11 = pnand %p3756_p9, %p37_p3 }
  0x48   : > { %s195_s6 = sshll.u32 %s187_s5, 4  ;;  %s184_s7 = scalar_lea.sflag [#allocation5], %s183_s26  ;;  %s4691_s6 = int_to_ptr.vmem [resolvable:$true] %s195_s6 }
  0x49   : > { %s4410_s8 = scalar_lea.hbm %s4689_s30, 256  ;;  %p4412_p0 = pneg %p4693_p11 }
  0x4a   : > { %p4411_p12 = scmp.ne.s32.totalorder %s4689_s30, %s4410_s8  ;;  %s4415_s12 = scalar_lea.hbm %s6036_s0, 512 }
  0x4b   : > { %p4416_p13 = scmp.lt.u32.totalorder %s4689_s30, %s6036_s0  ;;  %p4417_p6 = scmp.lt.u32.totalorder %s4415_s12, %s4410_s8 }
  0x4c   : > { %p4413_p2 = pnand %p4412_p0, %p4411_p12  ;;  %p4419_p3 = scmp.lt.u32.totalorder %s4410_s8, %s4689_s30 }
  0x4d   : > { %p4418_p10 = por %p4417_p6, %p4416_p13 }
  0x4e   : > { %p4414_p1 = pneg %p4413_p2 }
  0x4f   : > { %p4420_p5 = por %p4419_p3, %p4418_p10 }
  0x51   : > { %p4421_p9 = pnand %p4420_p5, %p4414_p1 }
  0x53   : > { %4424 = shalt.err (!%p4421_p9)
}
  0x54   : > { %s4425_s26 = scalar_lea.vmem %s4691_s6, 256  ;;  %s4518_s28 = smov [#allocation4]  }
  0x55   : > { %p4426_p12 = scmp.ne.s32.totalorder %s4691_s6, %s4425_s26  ;;  %s4430_s27 = sshll.u32 %s4518_s28, 4  ;;  %s4431_s27 = int_to_ptr.vmem [resolvable:$false] %s4430_s27 }
  0x56   : > { %s4432_s29 = scalar_lea.vmem %s4431_s27, 512  ;;  %p4433_p4 = scmp.lt.s32.totalorder %s4691_s6, %s4431_s27 }
  0x57   : > { %p4428_p2 = pnand %p4426_p12, %p4412_p0  ;;  %p4434_p13 = scmp.lt.s32.totalorder %s4432_s29, %s4425_s26 }
  0x59   : > { %p4429_p7 = pneg %p4428_p2  ;;  %p4435_p6 = por %p4434_p13, %p4433_p4 }
  0x5b   : > { %p4436_p10 = pnand %p4435_p6, %p4429_p7 }
  0x5d   : > { %4439 = shalt.err (!%p4436_p10)
}
  0x5e   : > { %3749 = dma.hbm_to_vmem [thread:$0]  (!%p4693_p11), %s4689_s30, 256, %s4691_s6, %s184_s7  }
  0x5f   : > { %204 = sbr.rel (%p4596_p8) target bundleno = 1401 (0x579), region = 36  ;;  %s4725_s5 = sand.u32 (!%p4596_p8), 1, %s4502_s16  }
  0x60   : > { %s3495_s8 = sshll.u32 (!%p4596_p8), %s4725_s5, 4  ;;  %s207_s9 = scalar_lea.sflag (!%p4596_p8), [#allocation5], %s4725_s5 }
  0x61   : > { %s210_s10 = scalar_lea.vmem (!%p4596_p8), [#allocation4], %s3495_s8  ;;  %p6051_p4 = scmp.ne.s32.totalorder (!%p4596_p8), %s6044_s21, 0 }
  0x66   : > { %4485 = dma.done.wait (%p6051_p4), %s207_s9, 256  }
  0x67   : > { %4487 = vsyncadd (%p6051_p4), %s207_s9, 4294967040  ;;  %p6052_p7 = scmp.eq.s32.totalorder %s4577_s19, 0 }
  0x69   : > { %4489 = dma.done.wait (%p6052_p7), [#allocation8], 1792   ;;  %p6053_p11 = pmov %p6052_p7 }
  0x6a   : > { %v286_v0 = vlaneseq  ;;  %v4519_v1 = vmov 0.0   ;;  %v284_v7 = vld [vmem:[#allocation9] ss:$8 sm:$0xf]  ;;  %s4520_s21 = smov 119   ;;  %s4521_s23 = smov 120  }
  0x6b   : > { %4491 = vsyncadd (%p6053_p11), [#allocation8], 4294965504  ;;  %243 = vst [vmem:[#allocation2] sm:$0xff] %v4519_v1  ;;  %986 = vmatprep.mubr.f32.mxu0 %v4519_v1  ;;  %1057 = vmatprep.mubr.f32.mxu1 %v4519_v1  ;;  %v358_v12 = vld [vmem:[#allocation9 + $0x1] ss:$8 sm:$0xf] }
  0x6c   : > { %245 = vst [vmem:[#allocation2 + $0x8] sm:$0xf0] %v4519_v1  ;;  %246 = vst [vmem:[#allocation2 + $0x10] sm:$0xf0] %v4519_v1  ;;  %v287_v2 = vshrl.u32 %v286_v0, 7  ;;  %v267_v13 = vld [vmem:[%s210_s10] sm:$0xff] }
  0x6d   : > { %247 = vst [vmem:[#allocation2 + $0x18] sm:$0xf0] %v4519_v1  ;;  %248 = vst [vmem:[#allocation2 + $0x20] sm:$0xf0] %v4519_v1  ;;  %v268_v14 = vld [vmem:[%s210_s10 + $0x8] sm:$0xff]  ;;  %v271_v17 = vcombine.high %v267_v13, %v267_v13  ;;  %s4522_s30 = smov 121  }
  0x6e   : > { %v4744_v3 = vsub.s32 2, %v287_v2  ;;  %v4746_v4 = vsub.s32 0, %v287_v2  ;;  %v4748_v5 = vsub.s32 3, %v287_v2  ;;  %v4750_v6 = vsub.s32 1, %v287_v2  ;;  %275 = vst [vmem:[#allocation2 + $0x8] sm:$0xf] %v267_v13 }
  0x6f   : > { %277 = vst [vmem:[#allocation2 + $0x18] sm:$0xf] %v268_v14  ;;  %v272_v18 = vcombine.high %v268_v14, %v268_v14  ;;  %276 = vst [vmem:[#allocation2 + $0x10] sm:$0xf] %v271_v17  ;;  %s4523_s6 = smov 127   ;;  %s4524_s25 = smov 1  }
  0x70   : > { %v297_v8 = vrot.slane %v284_v7, %v4744_v3  ;;  %v289_v9 = vrot.slane %v284_v7, %v4746_v4  ;;  %v301_v10 = vrot.slane %v284_v7, %v4748_v5  ;;  %v293_v11 = vrot.slane %v284_v7, %v4750_v6  ;;  %v432_v21 = vld [vmem:[#allocation9 + $0x2] ss:$8 sm:$0xf]  ;;  %v506_v26 = vld [vmem:[#allocation9 + $0x3] ss:$8 sm:$0xf] }
  0x71   : > { %v367_v15 = vrot.slane %v358_v12, %v4750_v6  ;;  %v363_v16 = vrot.slane %v358_v12, %v4746_v4  ;;  %v375_v19 = vrot.slane %v358_v12, %v4748_v5  ;;  %v371_v20 = vrot.slane %v358_v12, %v4744_v3  ;;  %278 = vst [vmem:[#allocation2 + $0x20] sm:$0xf] %v272_v18  ;;  %v588_v31 = vld [vmem:[#allocation9 + $0x5] ss:$8 sm:$0xf]  ;;  %s4525_s7 = smov 7  }
  0x72   : > { %306 = vrot.lane.b32.xlu1 %v297_v8, %s4520_s21  ;;  %302 = vrot.lane.b32.xlu0 %v289_v9, %s4520_s21  ;;  %v441_v22 = vrot.slane %v432_v21, %v4750_v6  ;;  %v437_v23 = vrot.slane %v432_v21, %v4746_v4  ;;  %v449_v24 = vrot.slane %v432_v21, %v4748_v5  ;;  %v660_v36 = vld [vmem:[#allocation9 + $0x6] ss:$8 sm:$0xf]  ;;  %v732_v41 = vld [vmem:[#allocation9 + $0x7] ss:$8 sm:$0xf] }
  0x73   : > { %v445_v25 = vrot.slane %v432_v21, %v4744_v3  ;;  %v515_v27 = vrot.slane %v506_v26, %v4750_v6  ;;  %v511_v28 = vrot.slane %v506_v26, %v4746_v4  ;;  %v523_v29 = vrot.slane %v506_v26, %v4748_v5  ;;  %s4526_s12 = smov 8   ;;  %v804_v46 = vld [vmem:[#allocation9 + $0x20] ss:$8 sm:$0xf]  ;;  %s4527_s13 = smov 9  }
  0x74   : > { %v519_v30 = vrot.slane %v506_v26, %v4744_v3  ;;  %v597_v32 = vrot.slane %v588_v31, %v4750_v6  ;;  %v593_v33 = vrot.slane %v588_v31, %v4746_v4  ;;  %v605_v34 = vrot.slane %v588_v31, %v4748_v5  ;;  %s4528_s24 = smov 64   ;;  %s3498_s8 = sshll.u32 %s4725_s5, 5 }
  0x75   : > { %v601_v35 = vrot.slane %v588_v31, %v4744_v3  ;;  %v669_v37 = vrot.slane %v660_v36, %v4750_v6  ;;  %v665_v38 = vrot.slane %v660_v36, %v4746_v4  ;;  %v677_v39 = vrot.slane %v660_v36, %v4748_v5  ;;  %v4816_v51 = vld [vmem:[#allocation2 + $0x8] sm:$0xff]  ;;  %s3518_s9 = sshll.u32 %s4577_s19, 9  ;;  %s242_s10 = scalar_lea.vmem [#allocation10], %s3498_s8 }
  0x76   : > { %308 = vrot.lane.b32.xlu1 %v301_v10, %s4520_s21  ;;  %304 = vrot.lane.b32.xlu0 %v293_v11, %s4520_s21  ;;  %v673_v40 = vrot.slane %v660_v36, %v4744_v3  ;;  %v741_v42 = vrot.slane %v732_v41, %v4750_v6  ;;  %v737_v43 = vrot.slane %v732_v41, %v4746_v4  ;;  %v4818_v52 = vld [vmem:[#allocation2 + $0x10] sm:$0xff]  ;;  %v4820_v53 = vld [vmem:[#allocation2 + $0x18] sm:$0xff]  ;;  %vm310_vm0 = vcmask 973824   ;;  %s3383_s19 = scalar_lea.sflag [#allocation6], %s4725_s5  ;;  %p6054_p0 = scmp.ne.s32.totalorder %s6049_s20, 0 }
  0x77   : > { %v749_v44 = vrot.slane %v732_v41, %v4748_v5  ;;  %v745_v45 = vrot.slane %v732_v41, %v4744_v3  ;;  %v813_v47 = vrot.slane %v804_v46, %v4750_v6  ;;  %v809_v48 = vrot.slane %v804_v46, %v4746_v4 }
  0x78   : > { %v821_v49 = vrot.slane %v804_v46, %v4748_v5  ;;  %v817_v50 = vrot.slane %v804_v46, %v4744_v3  ;;  %v4822_v54 = vld [vmem:[#allocation2 + $0x20] sm:$0xff]  ;;  %v3819_v55 = vpack.i.bf16 %v4818_v52, %v4816_v51  ;;  %v3844_v57 = vpack.i.bf16 %v4816_v51, %v4519_v1 }
  0x79   : > { %v3824_v56 = vpack.i.bf16 %v4822_v54, %v4820_v53  ;;  %vm384_vm1 = vcmask 982016   ;;  %vm458_vm2 = vcmask 990208   ;;  %vm532_vm3 = vcmask 1039360  }
  0x7a   : > { %378 = vrot.lane.b32.xlu1 %v367_v15, %s4521_s23  ;;  %376 = vrot.lane.b32.xlu0 %v363_v16, %s4521_s23  ;;  %vm561_vm4 = vcmask 7168   ;;  %vm487_vm5 = vcmask 56320   ;;  %vm413_vm6 = vcmask 64512   ;;  %vm339_vm7 = vcmask 72704  }
  0x7b   : > { %vm918_vm8 = vcmask 588800   ;;  %vm1199_vm9 = vcmask 523264  }
  0x7e   : > { %382 = vrot.lane.b32.xlu1 %v375_v19, %s4521_s23  ;;  %380 = vrot.lane.b32.xlu0 %v371_v20, %s4521_s23 }
  0x82   : > { %452 = vrot.lane.b32.xlu1 %v441_v22, %s4522_s30  ;;  %450 = vrot.lane.b32.xlu0 %v437_v23, %s4522_s30 }
  0x86   : > { %456 = vrot.lane.b32.xlu1 %v449_v24, %s4522_s30  ;;  %454 = vrot.lane.b32.xlu0 %v445_v25, %s4522_s30 }
  0x8a   : > { %526 = vrot.lane.b32.xlu1 %v515_v27, %s4523_s6  ;;  %524 = vrot.lane.b32.xlu0 %v511_v28, %s4523_s6 }
  0x8e   : > { %530 = vrot.lane.b32.xlu1 %v523_v29, %s4523_s6  ;;  %528 = vrot.lane.b32.xlu0 %v519_v30, %s4523_s6 }
  0x92   : > { %608 = vrot.lane.b32.xlu1 %v597_v32, %s4524_s25  ;;  %606 = vrot.lane.b32.xlu0 %v593_v33, %s4524_s25 }
  0x96   : > { %612 = vrot.lane.b32.xlu1 %v605_v34, %s4524_s25  ;;  %610 = vrot.lane.b32.xlu0 %v601_v35, %s4524_s25 }
  0x9a   : > { %680 = vrot.lane.b32.xlu1 %v669_v37, %s4525_s7  ;;  %678 = vrot.lane.b32.xlu0 %v665_v38, %s4525_s7 }
  0x9e   : > { %684 = vrot.lane.b32.xlu1 %v677_v39, %s4525_s7  ;;  %682 = vrot.lane.b32.xlu0 %v673_v40, %s4525_s7 }
  0xa2   : > { %752 = vrot.lane.b32.xlu1 %v741_v42, %s4526_s12  ;;  %750 = vrot.lane.b32.xlu0 %v737_v43, %s4526_s12 }
  0xa6   : > { %756 = vrot.lane.b32.xlu1 %v749_v44, %s4526_s12  ;;  %754 = vrot.lane.b32.xlu0 %v745_v45, %s4526_s12 }
  0xaa   : > { %824 = vrot.lane.b32.xlu1 %v813_v47, %s4527_s13  ;;  %822 = vrot.lane.b32.xlu0 %v809_v48, %s4527_s13 }
  0xae   : > { %828 = vrot.lane.b32.xlu1 %v821_v49, %s4527_s13  ;;  %826 = vrot.lane.b32.xlu0 %v817_v50, %s4527_s13 }
  0xb2   : > { %3810 = vrot.lane.b32.xlu0 %v4519_v1, %s4528_s24  ;;  %3815 = vrot.lane.b32.xlu1 %v4519_v1, %s4528_s24 }
  0xb6   : > { %3820 = vrot.lane.b32.xlu0 %v3819_v55, %s4528_s24  ;;  %3825 = vrot.lane.b32.xlu1 %v3824_v56, %s4528_s24 }
  0xba   : > { %3830 = vrot.lane.b32.xlu0 %v4519_v1, %s4528_s24  ;;  %3835 = vrot.lane.b32.xlu1 %v4519_v1, %s4528_s24 }
  0xbe   : > { %3845 = vrot.lane.b32.xlu0 %v3844_v57, %s4528_s24  ;;  %3840 = vrot.lane.b32.xlu1 %v3824_v56, %s4528_s24 }
  0xe4   : > { %v307_v58 = vpop.permute.xlu1 %306  ;;  %v303_v59 = vpop.permute.xlu0 %302 }
  0xe5   : > { %v319_v36 = vmul.f32 0.0, %v303_v59 }
  0xe8   : > { %v309_v60 = vpop.permute.xlu1 %308  ;;  %v305_v61 = vpop.permute.xlu0 %304 }
  0xe9   : > { %v323_v62 = vmul.f32 %v4822_v54, %v309_v60  ;;  %v311_v31 = vsel %vm310_vm0, %v303_v59, %v305_v61  ;;  %v313_v39 = vsel %vm310_vm0, %v307_v58, %v309_v60  ;;  %v312_v40 = vsel %vm310_vm0, %v305_v61, %v307_v58 }
  0xea   : > { %v320_v32 = vmul.f32 %v4816_v51, %v311_v31  ;;  %v322_v48 = vmul.f32 %v4820_v53, %v313_v39  ;;  %v321_v49 = vmul.f32 %v4818_v52, %v312_v40 }
  0xeb   : > { %337 = vrot.lane.b32.xlu0 %v323_v62, %s4527_s13 }
  0xec   : > { %v379_v63 = vpop.permute.xlu1 %378  ;;  %v4844_v0 = vpop.permute.xlu0 %376  ;;  %v3849_v43 = vpack.i.bf16 %v320_v32, %v319_v36 }
  0xed   : > { %v385_v57 = vsel %vm384_vm1, %v4844_v0, %v379_v63  ;;  %v393_v62 = vmul.f32 0.0, %v4844_v0 }
  0xf0   : > { %v383_v2 = vpop.permute.xlu1 %382  ;;  %v381_v7 = vpop.permute.xlu0 %380 }
  0xf1   : > { %v397_v8 = vmul.f32 %v4822_v54, %v383_v2  ;;  %v386_v37 = vsel %vm384_vm1, %v379_v63, %v381_v7  ;;  %v387_v38 = vsel %vm384_vm1, %v381_v7, %v383_v2  ;;  %v394_v2 = vmul.f32 %v4816_v51, %v385_v57 }
  0xf2   : > { %v395_v44 = vmul.f32 %v4818_v52, %v386_v37  ;;  %v396_v45 = vmul.f32 %v4820_v53, %v387_v38  ;;  %v3854_v7 = vpack.i.bf16 %v322_v48, %v321_v49 }
  0xf3   : > { %411 = vrot.lane.b32.xlu1 %v397_v8, %s4526_s12 }
  0xf4   : > { %v4848_v9 = vpop.permute.xlu1 %452  ;;  %v451_v10 = vpop.permute.xlu0 %450  ;;  %v3864_v59 = vpack.i.bf16 %v396_v45, %v395_v44 }
  0xf5   : > { %v459_v46 = vsel %vm458_vm2, %v451_v10, %v4848_v9  ;;  %v467_v50 = vmul.f32 0.0, %v451_v10 }
  0xf6   : > { %v468_v55 = vmul.f32 %v4816_v51, %v459_v46 }
  0xf8   : > { %v4850_v11 = vpop.permute.xlu1 %456  ;;  %v4852_v12 = vpop.permute.xlu0 %454  ;;  %v3869_v63 = vpack.i.bf16 %v468_v55, %v467_v50 }
  0xf9   : > { %v471_v13 = vmul.f32 %v4822_v54, %v4850_v11  ;;  %v460_v8 = vsel %vm458_vm2, %v4848_v9, %v4852_v12  ;;  %v461_v10 = vsel %vm458_vm2, %v4852_v12, %v4850_v11 }
  0xfa   : > { %v470_v9 = vmul.f32 %v4820_v53, %v461_v10 }
  0xfb   : > { %485 = vrot.lane.b32.xlu0 %v471_v13, %s4525_s7 }
  0xfc   : > { %v4857_v14 = vpop.permute.xlu1 %526  ;;  %v4859_v15 = vpop.permute.xlu0 %524 }
  0xfd   : > { %v533_v11 = vsel %vm532_vm3, %v4859_v15, %v4857_v14 }
 0x100   : > { %v531_v16 = vpop.permute.xlu1 %530  ;;  %v529_v17 = vpop.permute.xlu0 %528 }
 0x101   : > { %v545_v18 = vmul.f32 %v4822_v54, %v531_v16  ;;  %v534_v60 = vsel %vm532_vm3, %v4857_v14, %v529_v17  ;;  %v535_v61 = vsel %vm532_vm3, %v529_v17, %v531_v16  ;;  %v469_v17 = vmul.f32 %v4818_v52, %v460_v8 }
 0x102   : > { %v543_v13 = vmul.f32 %v4818_v52, %v534_v60  ;;  %v544_v16 = vmul.f32 %v4820_v53, %v535_v61  ;;  %v541_v14 = vmul.f32 0.0, %v4859_v15 }
 0x103   : > { %559 = vrot.lane.b32.xlu1 %v545_v18, %s4524_s25  ;;  %v3859_v18 = vpack.i.bf16 %v394_v2, %v393_v62 }
 0x104   : > { %v4863_v19 = vpop.permute.xlu1 %608  ;;  %v4865_v20 = vpop.permute.xlu0 %606 }
 0x105   : > { %v614_v0 = vsel %vm561_vm4, %v4865_v20, %v4863_v19  ;;  %v622_v12 = vmul.f32 %v4865_v20, %v4816_v51  ;;  %v542_v20 = vmul.f32 %v4816_v51, %v533_v11 }
 0x108   : > { %v4867_v21 = vpop.permute.xlu1 %612  ;;  %v4869_v22 = vpop.permute.xlu0 %610 }
 0x109   : > { %v626_v23 = vmul.f32 0.0, %v4867_v21  ;;  %v615_v36 = vsel %vm561_vm4, %v4863_v19, %v4869_v22  ;;  %v3879_v19 = vpack.i.bf16 %v542_v20, %v541_v14 }
 0x10b   : > { %640 = vrot.lane.b32.xlu0 %v626_v23, %s4523_s6  ;;  %v623_v23 = vmul.f32 %v614_v0, %v4818_v52 }
 0x10c   : > { %v4873_v24 = vpop.permute.xlu1 %680  ;;  %v4875_v25 = vpop.permute.xlu0 %678 }
 0x10d   : > { %v3889_v39 = vpack.i.bf16 %v623_v23, %v622_v12 }
 0x110   : > { %v4877_v26 = vpop.permute.xlu1 %684  ;;  %v4879_v27 = vpop.permute.xlu0 %682 }
 0x111   : > { %v698_v28 = vmul.f32 0.0, %v4877_v26  ;;  %v687_v31 = vsel %vm487_vm5, %v4873_v24, %v4879_v27  ;;  %v688_v32 = vsel %vm487_vm5, %v4879_v27, %v4877_v26  ;;  %v616_v26 = vsel %vm561_vm4, %v4869_v22, %v4867_v21 }
 0x112   : > { %v696_v37 = vmul.f32 %v687_v31, %v4820_v53  ;;  %v697_v38 = vmul.f32 %v688_v32, %v4822_v54  ;;  %v624_v27 = vmul.f32 %v615_v36, %v4820_v53  ;;  %v625_v40 = vmul.f32 %v616_v26, %v4822_v54 }
 0x113   : > { %712 = vrot.lane.b32.xlu1 %v698_v28, %s4522_s30  ;;  %v3884_v28 = vpack.i.bf16 %v544_v16, %v543_v13  ;;  %v686_v21 = vsel %vm487_vm5, %v4875_v25, %v4873_v24  ;;  %v694_v22 = vmul.f32 %v4875_v25, %v4816_v51 }
 0x114   : > { %v4883_v29 = vpop.permute.xlu1 %752  ;;  %v4885_v30 = vpop.permute.xlu0 %750  ;;  %v3904_v45 = vpack.i.bf16 %v697_v38, %v696_v37  ;;  %v695_v46 = vmul.f32 %v686_v21, %v4818_v52 }
 0x115   : > { %v758_v15 = vsel %vm413_vm6, %v4885_v30, %v4883_v29 }
 0x116   : > { %v767_v44 = vmul.f32 %v758_v15, %v4818_v52  ;;  %v3899_v57 = vpack.i.bf16 %v695_v46, %v694_v22 }
 0x118   : > { %v4889_v33 = vpop.permute.xlu1 %756  ;;  %v4891_v34 = vpop.permute.xlu0 %754 }
 0x119   : > { %v770_v35 = vmul.f32 0.0, %v4889_v33  ;;  %v760_v24 = vsel %vm413_vm6, %v4891_v34, %v4889_v33 }
 0x11a   : > { %v769_v55 = vmul.f32 %v760_v24, %v4822_v54 }
 0x11b   : > { %784 = vrot.lane.b32.xlu0 %v770_v35, %s4521_s23  ;;  %v3874_v35 = vpack.i.bf16 %v470_v9, %v469_v17 }
 0x11c   : > { %v4899_v41 = vpop.permute.xlu1 %824  ;;  %v4901_v42 = vpop.permute.xlu0 %822 }
 0x11d   : > { %v838_v47 = vmul.f32 %v4901_v42, %v4816_v51  ;;  %v830_v49 = vsel %vm339_vm7, %v4901_v42, %v4899_v41 }
 0x11f   : > { %848 = vrot.lane.b32.xlu1 %v838_v47, %s4520_s21  ;;  %3850 = vrot.lane.b32.xlu0 %v3849_v43, %s4527_s13  ;;  %v766_v43 = vmul.f32 %v4885_v30, %v4816_v51  ;;  %v3894_v47 = vpack.i.bf16 %v625_v40, %v624_v27  ;;  %v759_v30 = vsel %vm413_vm6, %v4883_v29, %v4891_v34 }
 0x120   : > { %v4914_v56 = vpop.permute.xlu1 %828  ;;  %v827_v50 = vpop.permute.xlu0 %826  ;;  %v768_v25 = vmul.f32 %v759_v30, %v4820_v53  ;;  %v839_v29 = vmul.f32 %v830_v49, %v4818_v52 }
 0x121   : > { %v842_v58 = vmul.f32 0.0, %v4914_v56  ;;  %v3909_v48 = vpack.i.bf16 %v767_v44, %v766_v43  ;;  %v831_v42 = vsel %vm339_vm7, %v4899_v41, %v827_v50 }
 0x122   : > { %v3914_v33 = vpack.i.bf16 %v769_v55, %v768_v25 }
 0x123   : > { %856 = vrot.lane.b32.xlu1 %v842_v58, %s4520_s21  ;;  %3865 = vrot.lane.b32.xlu0 %v3864_v59, %s4526_s12  ;;  %v832_v58 = vsel %vm339_vm7, %v827_v50, %v4914_v56  ;;  %v840_v59 = vmul.f32 %v831_v42, %v4820_v53 }
 0x124   : > { %v841_v34 = vmul.f32 %v832_v58, %v4822_v54  ;;  %v5008_v60 = vpop.permute.xlu0 %3810  ;;  %v5010_v56 = vpop.permute.xlu1 %3815 }
 0x127   : > { %3855 = vrot.lane.b32.xlu1 %v3854_v7, %s4527_s13  ;;  %3870 = vrot.lane.b32.xlu0 %v3869_v63, %s4525_s7 }
 0x128   : > { %v5012_v61 = vpop.permute.xlu0 %3820  ;;  %v5014_v62 = vpop.permute.xlu1 %3825 }
 0x12b   : > { %3860 = vrot.lane.b32.xlu1 %v3859_v18, %s4526_s12  ;;  %3885 = vrot.lane.b32.xlu0 %v3884_v28, %s4524_s25 }
 0x12c   : > { %v5016_v2 = vpop.permute.xlu0 %3830  ;;  %v5018_v7 = vpop.permute.xlu1 %3835 }
 0x12f   : > { %3875 = vrot.lane.b32.xlu1 %v3874_v35, %s4525_s7  ;;  %3890 = vrot.lane.b32.xlu0 %v3889_v39, %s4523_s6 }
 0x130   : > { %v5020_v41 = vpop.permute.xlu0 %3845  ;;  %v5022_v63 = vpop.permute.xlu1 %3840 }
 0x133   : > { %3880 = vrot.lane.b32.xlu1 %v3879_v19, %s4524_s25  ;;  %3905 = vrot.lane.b32.xlu0 %v3904_v45, %s4522_s30 }
 0x137   : > { %3895 = vrot.lane.b32.xlu1 %v3894_v47, %s4523_s6  ;;  %3910 = vrot.lane.b32.xlu0 %v3909_v48, %s4521_s23 }
 0x13b   : > { %3900 = vrot.lane.b32.xlu1 %v3899_v57, %s4522_s30  ;;  %850 = vrot.lane.b32.xlu0 %v839_v29, %s4520_s21 }
 0x13f   : > { %3915 = vrot.lane.b32.xlu1 %v3914_v33, %s4521_s23  ;;  %854 = vrot.lane.b32.xlu0 %v841_v34, %s4520_s21 }
 0x143   : > { %852 = vrot.lane.b32.xlu1 %v840_v59, %s4520_s21 }
 0x15d   : > { %v338_v8 = vpop.permute.xlu0 %337 }
 0x165   : > { %v412_v10 = vpop.permute.xlu1 %411 }
 0x16d   : > { %v486_v13 = vpop.permute.xlu0 %485 }
 0x175   : > { %v560_v16 = vpop.permute.xlu1 %559 }
 0x17d   : > { %v5024_v0 = vpop.permute.xlu0 %640 }
 0x185   : > { %v5026_v17 = vpop.permute.xlu1 %712 }
 0x18d   : > { %v5028_v9 = vpop.permute.xlu0 %784 }
 0x191   : > { %v5030_v18 = vpop.permute.xlu1 %848  ;;  %v3851_v11 = vpop.permute.xlu0 %3850 }
 0x192   : > { %v3853_v28 = vunpack.i.h.bf16 %v3851_v11  ;;  %v3852_v31 = vunpack.i.l.bf16 %v3851_v11 }
 0x194   : > { %v5038_v39 = vsel %vm339_vm7, %v3852_v31, %v3853_v28 }
 0x195   : > { %v5032_v12 = vpop.permute.xlu1 %856  ;;  %v3866_v23 = vpop.permute.xlu0 %3865 }
 0x196   : > { %v3868_v32 = vunpack.i.h.bf16 %v3866_v23  ;;  %v3867_v14 = vunpack.i.l.bf16 %v3866_v23 }
 0x198   : > { %v5035_v38 = vsel %vm413_vm6, %v3868_v32, %v412_v10  ;;  %v5050_v19 = vsel %vm413_vm6, %v3867_v14, %v3868_v32 }
 0x199   : > { %v3856_v20 = vpop.permute.xlu1 %3855  ;;  %v3871_v35 = vpop.permute.xlu0 %3870  ;;  %v3934_v29 = vpack.i.bf16 %v5035_v38, %v5050_v19 }
 0x19a   : > { %v3858_v36 = vunpack.i.h.bf16 %v3856_v20  ;;  %v3857_v37 = vunpack.i.l.bf16 %v3856_v20  ;;  %v3873_v48 = vunpack.i.h.bf16 %v3871_v35  ;;  %v3872_v30 = vunpack.i.l.bf16 %v3871_v35 }
 0x19c   : > { %v5041_v26 = vsel %vm339_vm7, %v3857_v37, %v3858_v36  ;;  %v5044_v15 = vsel %vm339_vm7, %v3858_v36, %v338_v8  ;;  %v5047_v27 = vsel %vm339_vm7, %v3853_v28, %v3857_v37  ;;  %v5078_v8 = vsel %vm487_vm5, %v3872_v30, %v3873_v48 }
 0x19d   : > { %v3861_v40 = vpop.permute.xlu1 %3860  ;;  %v3886_v43 = vpop.permute.xlu0 %3885  ;;  %v3924_v44 = vpack.i.bf16 %v5044_v15, %v5041_v26  ;;  %v3535_v45 = vpack.c.bf16 %v5035_v38, %v5044_v15  ;;  %v3919_v21 = vpack.i.bf16 %v5047_v27, %v5038_v39  ;;  %v3537_v22 = vpack.c.bf16 %v5050_v19, %v5041_v26 }
 0x19e   : > { %v3863_v46 = vunpack.i.h.bf16 %v3861_v40  ;;  %v3862_v47 = vunpack.i.l.bf16 %v3861_v40  ;;  %v3888_v24 = vunpack.i.h.bf16 %v3886_v43  ;;  %v3887_v49 = vunpack.i.l.bf16 %v3886_v43 }
 0x19f   : > { %3925 = vrot.lane.b32.xlu1 %v3924_v44, %s4528_s24  ;;  %3536 = vmatprep.subr.bf16.mxu1 %v3535_v45 }
 0x1a0   : > { %3920 = vrot.lane.b32.xlu0 %v3919_v21, %s4528_s24  ;;  %3538 = vmatpush1.bf16.msra.mxu1 %v3537_v22  ;;  %v5063_v50 = vsel %vm413_vm6, %v3863_v46, %v3867_v14  ;;  %v5066_v25 = vsel %vm413_vm6, %v3862_v47, %v3863_v46  ;;  %v565_v10 = vsel %vm561_vm4, %v3888_v24, %v560_v16 }
 0x1a1   : > { %v3876_v55 = vpop.permute.xlu1 %3875  ;;  %v3891_v57 = vpop.permute.xlu0 %3890  ;;  %v3519_v58 = vpack.c.bf16 %v5063_v50, %v5047_v27  ;;  %v3929_v33 = vpack.i.bf16 %v5063_v50, %v5066_v25  ;;  %v3521_v34 = vpack.c.bf16 %v5066_v25, %v5038_v39  ;;  %v564_v11 = vsel %vm561_vm4, %v3887_v49, %v3888_v24 }
 0x1a2   : > { %v3878_v42 = vunpack.i.h.bf16 %v3876_v55  ;;  %v3877_v59 = vunpack.i.l.bf16 %v3876_v55  ;;  %v3893_v43 = vunpack.i.h.bf16 %v3891_v57  ;;  %v3892_v44 = vunpack.i.l.bf16 %v3891_v57 }
 0x1a3   : > { %3935 = vrot.lane.b32.xlu1 %v3934_v29, %s4528_s24  ;;  %3520 = vmatprep.subr.bf16.mxu0 %v3519_v58  ;;  %v5107_v55 = vpack.i.bf16 %v565_v10, %v564_v11 }
 0x1a4   : > { %3930 = vrot.lane.b32.xlu0 %v3929_v33, %s4528_s24  ;;  %3522 = vmatpush1.bf16.msra.mxu0 %v3521_v34  ;;  %v5084_v23 = vsel %vm487_vm5, %v3873_v48, %v3877_v59  ;;  %v491_v28 = vsel %vm487_vm5, %v3878_v42, %v486_v13  ;;  %v490_v31 = vsel %vm487_vm5, %v3877_v59, %v3878_v42 }
 0x1a5   : > { %v3881_v32 = vpop.permute.xlu1 %3880  ;;  %v3906_v14 = vpop.permute.xlu0 %3905  ;;  %v3939_v20 = vpack.i.bf16 %v5084_v23, %v5078_v8  ;;  %v3539_v35 = vpack.c.bf16 %v565_v10, %v491_v28  ;;  %v5090_v36 = vpack.i.bf16 %v491_v28, %v490_v31  ;;  %v3541_v16 = vpack.c.bf16 %v564_v11, %v490_v31 }
 0x1a6   : > { %v3883_v37 = vunpack.i.h.bf16 %v3881_v32  ;;  %v3882_v40 = vunpack.i.l.bf16 %v3881_v32  ;;  %v3908_v57 = vunpack.i.h.bf16 %v3906_v14  ;;  %v3907_v29 = vunpack.i.l.bf16 %v3906_v14 }
 0x1a7   : > { %3940 = vrot.lane.b32.xlu1 %v3939_v20, %s4528_s24  ;;  %3540 = vmatprep.subr.bf16.mxu1 %v3539_v35 }
 0x1a8   : > { %3945 = vrot.lane.b32.xlu0 %v5090_v36, %s4528_s24  ;;  %3542 = vmatpush1.bf16.msra.mxu1 %v3541_v16  ;;  %v5096_v13 = vsel %vm561_vm4, %v3882_v40, %v3883_v37  ;;  %v5099_v45 = vsel %vm561_vm4, %v3883_v37, %v3887_v49  ;;  %v5111_v49 = vsel %vm532_vm3, %v3892_v44, %v3893_v43 }
 0x1a9   : > { %v3896_v21 = vpop.permute.xlu1 %3895  ;;  %v3949_v22 = vpack.i.bf16 %v5099_v45, %v5096_v13  ;;  %v3523_v46 = vpack.c.bf16 %v5099_v45, %v5084_v23  ;;  %v3525_v47 = vpack.c.bf16 %v5096_v13, %v5078_v8  ;;  %v3911_v24 = vpop.permute.xlu0 %3910  ;;  %v716_v20 = vsel %vm458_vm2, %v3907_v29, %v3908_v57 }
 0x1aa   : > { %v3898_v48 = vunpack.i.h.bf16 %v3896_v21  ;;  %v3897_v30 = vunpack.i.l.bf16 %v3896_v21  ;;  %v3913_v35 = vunpack.i.h.bf16 %v3911_v24  ;;  %v3912_v16 = vunpack.i.l.bf16 %v3911_v24 }
 0x1ab   : > { %3950 = vrot.lane.b32.xlu1 %v3949_v22, %s4528_s24  ;;  %3524 = vmatprep.subr.bf16.mxu0 %v3523_v46 }
 0x1ac   : > { %3955 = vrot.lane.b32.xlu0 %v5107_v55, %s4528_s24  ;;  %3526 = vmatpush1.bf16.msra.mxu0 %v3525_v47  ;;  %v644_v58 = vsel %vm532_vm3, %v3897_v30, %v3898_v48  ;;  %v645_v33 = vsel %vm532_vm3, %v3898_v48, %v5024_v0  ;;  %v5119_v34 = vsel %vm532_vm3, %v3893_v43, %v3897_v30 }
 0x1ad   : > { %v3901_v42 = vpop.permute.xlu1 %3900  ;;  %v5121_v59 = vpack.i.bf16 %v645_v33, %v644_v58  ;;  %v3543_v10 = vpack.c.bf16 %v645_v33, %v4822_v54  ;;  %v3959_v11 = vpack.i.bf16 %v5119_v34, %v5111_v49  ;;  %v3527_v28 = vpack.c.bf16 %v5119_v34, %v4818_v52  ;;  %v851_v37 = vpop.permute.xlu0 %850 }
 0x1ae   : > { %v3903_v31 = vunpack.i.h.bf16 %v3901_v42  ;;  %v3902_v32 = vunpack.i.l.bf16 %v3901_v42  ;;  %v3545_v14 = vpack.c.bf16 %v644_v58, %v4820_v53  ;;  %v3529_v0 = vpack.c.bf16 %v5111_v49, %v4816_v51 }
 0x1af   : > { %3965 = vrot.lane.b32.xlu1 %v5121_v59, %s4528_s24  ;;  %3544 = vmatprep.subr.bf16.mxu1 %v3543_v10  ;;  %v717_v54 = vsel %vm458_vm2, %v3908_v57, %v5026_v17  ;;  %v5151_v22 = vsel %vm384_vm1, %v3912_v16, %v3913_v35 }
 0x1b0   : > { %3960 = vrot.lane.b32.xlu0 %v3959_v11, %s4528_s24  ;;  %3528 = vmatprep.subr.bf16.mxu0 %v3527_v28  ;;  %v5138_v53 = vsel %vm458_vm2, %v3902_v32, %v3903_v31  ;;  %v5141_v40 = vsel %vm458_vm2, %v3903_v31, %v3907_v29  ;;  %v5145_v21 = vpack.i.bf16 %v717_v54, %v716_v20  ;;  %v917_v31 = vld [vmem:[#allocation7 + $0x8] sm:$0xff] }
 0x1b1   : > { %3530 = vmatpush1.bf16.msra.mxu0 %v3529_v0  ;;  %3546 = vmatpush1.bf16.msra.mxu1 %v3545_v14  ;;  %v3916_v51 = vpop.permute.xlu1 %3915  ;;  %v3969_v43 = vpack.i.bf16 %v5141_v40, %v5138_v53  ;;  %v855_v58 = vpop.permute.xlu0 %854  ;;  %v3533_v10 = vpack.c.bf16 %v5151_v22, %v5138_v53  ;;  %v858_v28 = vsel %vm310_vm0, %v5030_v18, %v851_v37 }
 0x1b2   : > { %v3918_v44 = vunpack.i.h.bf16 %v3916_v51  ;;  %v3917_v17 = vunpack.i.l.bf16 %v3916_v51  ;;  %v861_v11 = vsel %vm310_vm0, %v855_v58, %v5032_v12  ;;  %v3994_v18 = vpack.i.bf16 %v4519_v1, %v5044_v15 }
 0x1b3   : > { %3970 = vrot.lane.b32.xlu1 %v3969_v43, %s4528_s24  ;;  %v3989_v12 = vpack.i.bf16 %v5041_v26, %v5047_v27  ;;  %v4004_v14 = vpack.i.bf16 %v4519_v1, %v5035_v38  ;;  %v3999_v0 = vpack.i.bf16 %v5050_v19, %v5063_v50  ;;  %v4014_v15 = vpack.i.bf16 %v5084_v23, %v5066_v25  ;;  %v1843_v23 = vld [vmem:[#allocation9] ss:$8 sm:$0xf] }
 0x1b4   : > { %3975 = vrot.lane.b32.xlu0 %v5145_v21, %s4528_s24  ;;  %v787_v46 = vsel %vm384_vm1, %v3913_v35, %v3917_v17  ;;  %v789_v47 = vsel %vm384_vm1, %v3918_v44, %v5028_v9  ;;  %v788_v48 = vsel %vm384_vm1, %v3917_v17, %v3918_v44  ;;  %v4009_v26 = vpack.i.bf16 %v5038_v39, %v4519_v1 }
 0x1b5   : > { %v3979_v30 = vpack.i.bf16 %v787_v46, %v5151_v22  ;;  %v3547_v24 = vpack.c.bf16 %v789_v47, %v717_v54  ;;  %v3984_v57 = vpack.i.bf16 %v789_v47, %v788_v48  ;;  %v3531_v29 = vpack.c.bf16 %v787_v46, %v5141_v40  ;;  %v853_v33 = vpop.permute.xlu1 %852  ;;  %v1985_v54 = vld [vmem:[#allocation9 + $0x2] ss:$8 sm:$0xf] }
 0x1b6   : > { %v3549_v42 = vpack.c.bf16 %v788_v48, %v716_v20  ;;  %v859_v9 = vsel %vm310_vm0, %v851_v37, %v853_v33  ;;  %v860_v32 = vsel %vm310_vm0, %v853_v33, %v855_v58  ;;  %v4024_v38 = vpack.i.bf16 %v5099_v45, %v4519_v1 }
 0x1b7   : > { %3980 = vrot.lane.b32.xlu1 %v3979_v30, %s4528_s24  ;;  %3548 = vmatprep.subr.bf16.mxu1 %v3547_v24  ;;  %v4034_v27 = vpack.i.bf16 %v5078_v8, %v4519_v1  ;;  %v4039_v39 = vpack.i.bf16 %v4818_v52, %v5096_v13  ;;  %v4054_v19 = vpack.i.bf16 %v5141_v40, %v5111_v49  ;;  %v4529_v8 = vmov 0   ;;  %v1820_v13 = vld [vmem:[%s6038_s2] sm:$0xff] }
 0x1b8   : > { %3985 = vrot.lane.b32.xlu0 %v3984_v57, %s4528_s24  ;;  %3532 = vmatprep.subr.bf16.mxu0 %v3531_v29  ;;  %v4044_v50 = vpack.i.bf16 %v5119_v34, %v4519_v1  ;;  %v4064_v25 = vpack.i.bf16 %v787_v46, %v4519_v1  ;;  %v4074_v52 = vpack.i.bf16 %v5138_v53, %v4519_v1  ;;  %v1914_v49 = vld [vmem:[#allocation9 + $0x1] ss:$8 sm:$0xf]  ;;  %v2056_v40 = vld [vmem:[#allocation9 + $0x3] ss:$8 sm:$0xf] }
 0x1b9   : > { %3534 = vmatpush1.bf16.msra.mxu0 %v3533_v10  ;;  %3550 = vmatpush1.bf16.msra.mxu1 %v3549_v42  ;;  %v1852_v45 = vrot.slane %v1843_v23, %v4750_v6  ;;  %v1860_v34 = vrot.slane %v1843_v23, %v4748_v5  ;;  %v1927_v20 = vrot.slane %v1914_v49, %v4744_v3  ;;  %v5271_v42 = vld [vmem:[#allocation9 + $0x6] ss:$8 sm:$0xf]  ;;  %v3813_v10 = vunpack.i.h.bf16 %v5008_v60 }
 0x1ba   : > { %938 = vmatprep.subr.mxu0 %v859_v9  ;;  %1009 = vmatprep.subr.mxu1 %v861_v11  ;;  %v1931_v35 = vrot.slane %v1914_v49, %v4748_v5  ;;  %v1990_v16 = vrot.slane %v1985_v54, %v4746_v4  ;;  %v1994_v37 = vrot.slane %v1985_v54, %v4750_v6 }
 0x1bb   : > { %1193 = vrot.lane.b32.xlu1 %v859_v9, %s4528_s24  ;;  %4079 = vset.pattern.permute.xlu0 %v4529_v8  ;;  %v1998_v53 = vrot.slane %v1985_v54, %v4744_v3  ;;  %v2002_v51 = vrot.slane %v1985_v54, %v4748_v5  ;;  %v2061_v43 = vrot.slane %v2056_v40, %v4746_v4  ;;  %v3817_v54 = vunpack.i.l.bf16 %v5010_v56 }
 0x1bc   : > { %1191 = vrot.lane.b32.xlu0 %v858_v28, %s4528_s24  ;;  %v2065_v44 = vrot.slane %v2056_v40, %v4750_v6  ;;  %v2069_v17 = vrot.slane %v2056_v40, %v4744_v3 }
 0x1bd   : > { %939 = vmatpush1.msra.mxu0 %v858_v28  ;;  %1010 = vmatpush1.msra.mxu1 %v860_v32 }
 0x1be   : > { %3499 = vmatmul.mubr.msk.f32.vlgmr.msra.gmra.mrb[0].mxu0 %vm918_vm8, %v917_v31  ;;  %3500 = vmatmul.mubr.msk.f32.vlgmr.msra.gmra.mrb[0].mxu1 %vm918_vm8, %v917_v31  ;;  %v3818_v31 = vunpack.i.h.bf16 %v5010_v56 }
 0x1bf   : > { %1197 = vrot.lane.b32.xlu1 %v861_v11, %s4528_s24  ;;  %1410 = vmatprep.mubr.f32.mxu1 %v4519_v1 }
 0x1c0   : > { %1195 = vrot.lane.b32.xlu0 %v860_v32, %s4528_s24  ;;  %1339 = vmatprep.mubr.f32.mxu0 %v4519_v1 }
 0x1c3   : > { %3995 = vrot.lane.b32.xlu1 %v3994_v18, %s4528_s24 }
 0x1c4   : > { %3990 = vrot.lane.b32.xlu0 %v3989_v12, %s4528_s24 }
 0x1c7   : > { %4005 = vrot.lane.b32.xlu1 %v4004_v14, %s4528_s24 }
 0x1c8   : > { %4000 = vrot.lane.b32.xlu0 %v3999_v0, %s4528_s24 }
 0x1cb   : > { %4015 = vrot.lane.b32.xlu1 %v4014_v15, %s4528_s24 }
 0x1cc   : > { %4010 = vrot.lane.b32.xlu0 %v4009_v26, %s4528_s24  ;;  %v2211_v26 = vrot.slane %v5271_v42, %v4746_v4 }
 0x1cf   : > { %4025 = vrot.lane.b32.xlu1 %v4024_v38, %s4528_s24 }
 0x1d0   : > { %4020 = vrot.lane.b32.xlu0 %v5090_v36, %s4528_s24  ;;  %v1848_v36 = vrot.slane %v1843_v23, %v4746_v4 }
 0x1d3   : > { %4035 = vrot.lane.b32.xlu1 %v4034_v27, %s4528_s24 }
 0x1d4   : > { %4030 = vrot.lane.b32.xlu0 %v5107_v55, %s4528_s24  ;;  %v1856_v55 = vrot.slane %v1843_v23, %v4744_v3  ;;  %v3823_v23 = vunpack.i.h.bf16 %v5012_v61 }
 0x1d7   : > { %4050 = vrot.lane.b32.xlu1 %v5121_v59, %s4528_s24  ;;  %v1923_v59 = vrot.slane %v1914_v49, %v4750_v6 }
 0x1d8   : > { %4040 = vrot.lane.b32.xlu0 %v4039_v39, %s4528_s24 }
 0x1db   : > { %4055 = vrot.lane.b32.xlu1 %v4054_v19, %s4528_s24 }
 0x1dc   : > { %4045 = vrot.lane.b32.xlu0 %v4044_v50, %s4528_s24 }
 0x1df   : > { %4065 = vrot.lane.b32.xlu1 %v4064_v25, %s4528_s24 }
 0x1e0   : > { %4060 = vrot.lane.b32.xlu0 %v5145_v21, %s4528_s24  ;;  %v2135_v21 = vld [vmem:[#allocation9 + $0x5] ss:$8 sm:$0xf] }
 0x1e1   : > { %v2140_v46 = vrot.slane %v2135_v21, %v4746_v4  ;;  %v2144_v30 = vrot.slane %v2135_v21, %v4750_v6  ;;  %v2148_v24 = vrot.slane %v2135_v21, %v4744_v3  ;;  %v2152_v15 = vrot.slane %v2135_v21, %v4748_v5 }
 0x1e3   : > { %4075 = vrot.lane.b32.xlu1 %v4074_v52, %s4528_s24 }
 0x1e4   : > { %4070 = vrot.lane.b32.xlu0 %v3984_v57, %s4528_s24 }
 0x1e7   : > { %1591 = vrot.lane.b32.xlu1 %v859_v9, %s4528_s24  ;;  %v3812_v9 = vunpack.i.l.bf16 %v5008_v60 }
 0x1e8   : > { %1579 = vrot.lane.b32.xlu0 %v5151_v22, %s4528_s24  ;;  %v2073_v22 = vrot.slane %v2056_v40, %v4748_v5  ;;  %v3828_v40 = vunpack.i.h.bf16 %v5014_v62 }
 0x1eb   : > { %1595 = vrot.lane.b32.xlu1 %v861_v11, %s4528_s24 }
 0x1ec   : > { %1593 = vrot.lane.b32.xlu0 %v860_v32, %s4528_s24 }
 0x1ef   : > { %1589 = vrot.lane.b32.xlu1 %v858_v28, %s4528_s24  ;;  %v3822_v28 = vunpack.i.l.bf16 %v5012_v61  ;;  %v2348_v61 = vld [vmem:[#allocation9 + $0x20] ss:$8 sm:$0xf] }
 0x1f0   : > { %1597 = vrot.lane.b32.xlu0 %v4519_v1, %s4528_s24  ;;  %v1919_v1 = vrot.slane %v1914_v49, %v4746_v4 }
 0x1f1   : > { %v1217_v56 = vsel %vm1199_vm9, %v3822_v28, %v3823_v23 }
 0x1f3   : > { %1861 = vrot.lane.b32.xlu1 %v1848_v36, %s4520_s21 }
 0x1f4   : > { %1823 = vperm.xlu0 %4079, %v1820_v13  }
 0x1f7   : > { %1863 = vrot.lane.b32.xlu1 %v1852_v45, %s4520_s21 }
 0x1f8   : > { %1865 = vrot.lane.b32.xlu0 %v1856_v55, %s4520_s21 }
 0x1fb   : > { %1867 = vrot.lane.b32.xlu1 %v1860_v34, %s4520_s21 }
 0x1fc   : > { %1932 = vrot.lane.b32.xlu0 %v1919_v1, %s4521_s23 }
 0x1ff   : > { %1934 = vrot.lane.b32.xlu1 %v1923_v59, %s4521_s23  ;;  %v2215_v59 = vrot.slane %v5271_v42, %v4750_v6 }
 0x200   : > { %1936 = vrot.lane.b32.xlu0 %v1927_v20, %s4521_s23  ;;  %v5294_v20 = vld [vmem:[#allocation9 + $0x7] ss:$8 sm:$0xf] }
 0x203   : > { %1938 = vrot.lane.b32.xlu1 %v1931_v35, %s4521_s23 }
 0x204   : > { %2003 = vrot.lane.b32.xlu0 %v1990_v16, %s4522_s30 }
 0x207   : > { %2005 = vrot.lane.b32.xlu1 %v1994_v37, %s4522_s30  ;;  %v2219_v37 = vrot.slane %v5271_v42, %v4744_v3 }
 0x208   : > { %2007 = vrot.lane.b32.xlu0 %v1998_v53, %s4522_s30  ;;  %v3832_v53 = vunpack.i.l.bf16 %v5016_v2 }
 0x20b   : > { %2009 = vrot.lane.b32.xlu1 %v2002_v51, %s4522_s30  ;;  %v3827_v51 = vunpack.i.l.bf16 %v5014_v62 }
 0x20c   : > { %2074 = vrot.lane.b32.xlu0 %v2061_v43, %s4523_s6 }
 0x20f   : > { %2076 = vrot.lane.b32.xlu1 %v2065_v44, %s4523_s6 }
 0x210   : > { %2078 = vrot.lane.b32.xlu0 %v2069_v17, %s4523_s6 }
 0x211   : > { %v3926_v47 = vpop.permute.xlu1 %3925 }
 0x212   : > { %v3921_v48 = vpop.permute.xlu0 %3920  ;;  %v3928_v57 = vunpack.i.h.bf16 %v3926_v47  ;;  %v3927_v29 = vunpack.i.l.bf16 %v3926_v47 }
 0x213   : > { %2080 = vrot.lane.b32.xlu1 %v2073_v22, %s4523_s6  ;;  %v3923_v58 = vunpack.i.h.bf16 %v3921_v48  ;;  %v3922_v33 = vunpack.i.l.bf16 %v3921_v48  ;;  %v2223_v22 = vrot.slane %v5271_v42, %v4748_v5 }
 0x214   : > { %2153 = vrot.lane.b32.xlu0 %v2140_v46, %s4524_s25  ;;  %v1203_v27 = vsel %vm1199_vm9, %v3927_v29, %v3928_v57  ;;  %v2282_v46 = vrot.slane %v5294_v20, %v4746_v4 }
 0x215   : > { %v3936_v11 = vpop.permute.xlu1 %3935  ;;  %v1200_v60 = vsel %vm1199_vm9, %v3812_v9, %v3922_v33  ;;  %v1201_v38 = vsel %vm1199_vm9, %v3922_v33, %v3923_v58  ;;  %v1202_v36 = vsel %vm1199_vm9, %v3923_v58, %v3927_v29 }
 0x216   : > { %v3938_v32 = vunpack.i.h.bf16 %v3936_v11  ;;  %v3937_v18 = vunpack.i.l.bf16 %v3936_v11  ;;  %v3931_v12 = vpop.permute.xlu0 %3930 }
 0x217   : > { %v3933_v14 = vunpack.i.h.bf16 %v3931_v12  ;;  %v3932_v0 = vunpack.i.l.bf16 %v3931_v12  ;;  %2155 = vrot.lane.b32.xlu1 %v2144_v30, %s4524_s25 }
 0x218   : > { %v1207_v39 = vsel %vm1199_vm9, %v3937_v18, %v3938_v32  ;;  %2157 = vrot.lane.b32.xlu0 %v2148_v24, %s4524_s25 }
 0x219   : > { %v1206_v19 = vsel %vm1199_vm9, %v3933_v14, %v3937_v18  ;;  %v1204_v50 = vsel %vm1199_vm9, %v3813_v10, %v3932_v0  ;;  %v3941_v25 = vpop.permute.xlu1 %3940  ;;  %v1205_v52 = vsel %vm1199_vm9, %v3932_v0, %v3933_v14  ;;  %v3567_v8 = vpack.c.bf16 %v1207_v39, %v1203_v27 }
 0x21a   : > { %v3946_v13 = vpop.permute.xlu0 %3945  ;;  %v3551_v45 = vpack.c.bf16 %v1205_v52, %v1201_v38  ;;  %v3553_v55 = vpack.c.bf16 %v1204_v50, %v1200_v60  ;;  %v3943_v49 = vunpack.i.h.bf16 %v3941_v25  ;;  %v3942_v34 = vunpack.i.l.bf16 %v3941_v25 }
 0x21b   : > { %3568 = vmatprep.subr.bf16.mxu1 %v3567_v8  ;;  %v3569_v1 = vpack.c.bf16 %v1206_v19, %v1202_v36  ;;  %2159 = vrot.lane.b32.xlu1 %v2152_v15, %s4524_s25  ;;  %v3948_v35 = vunpack.i.h.bf16 %v3946_v13  ;;  %v3947_v16 = vunpack.i.l.bf16 %v3946_v13  ;;  %v2286_v60 = vrot.slane %v5294_v20, %v4750_v6 }
 0x21c   : > { %3552 = vmatprep.subr.bf16.mxu0 %v3551_v45  ;;  %2224 = vrot.lane.b32.xlu0 %v2211_v26, %s4525_s7  ;;  %v1208_v62 = vsel %vm1199_vm9, %v3817_v54, %v3942_v34  ;;  %v1209_v30 = vsel %vm1199_vm9, %v3942_v34, %v3943_v49  ;;  %v1216_v38 = vsel %vm1199_vm9, %v3832_v53, %v3822_v28  ;;  %v3838_v54 = vunpack.i.h.bf16 %v5018_v7 }
 0x21d   : > { %3554 = vmatpush1.bf16.msra.mxu0 %v3553_v55  ;;  %3570 = vmatpush1.bf16.msra.mxu1 %v3569_v1  ;;  %v3951_v43 = vpop.permute.xlu1 %3950  ;;  %v1210_v24 = vsel %vm1199_vm9, %v3943_v49, %v3947_v16  ;;  %v1211_v58 = vsel %vm1199_vm9, %v3947_v16, %v3948_v35  ;;  %v1219_v27 = vsel %vm1199_vm9, %v3827_v51, %v3828_v40  ;;  %v3837_v35 = vunpack.i.l.bf16 %v5018_v7 }
 0x21e   : > { %v3953_v44 = vunpack.i.h.bf16 %v3951_v43  ;;  %v3952_v17 = vunpack.i.l.bf16 %v3951_v43  ;;  %v3956_v21 = vpop.permute.xlu0 %3955  ;;  %v1218_v8 = vsel %vm1199_vm9, %v3823_v23, %v3827_v51  ;;  %v2290_v45 = vrot.slane %v5294_v20, %v4744_v3 }
 0x21f   : > { %v3958_v47 = vunpack.i.h.bf16 %v3956_v21  ;;  %v3957_v48 = vunpack.i.l.bf16 %v3956_v21  ;;  %2226 = vrot.lane.b32.xlu1 %v2215_v59, %s4525_s7  ;;  %v2294_v1 = vrot.slane %v5294_v20, %v4748_v5  ;;  %v2353_v51 = vrot.slane %v2348_v61, %v4746_v4 }
 0x220   : > { %v1212_v57 = vsel %vm1199_vm9, %v3818_v31, %v3952_v17  ;;  %v1213_v29 = vsel %vm1199_vm9, %v3952_v17, %v3953_v44  ;;  %2228 = vrot.lane.b32.xlu0 %v2219_v37, %s4525_s7  ;;  %v3833_v31 = vunpack.i.h.bf16 %v5016_v2  ;;  %v2357_v20 = vrot.slane %v2348_v61, %v4750_v6 }
 0x221   : > { %v1214_v33 = vsel %vm1199_vm9, %v3953_v44, %v3957_v48  ;;  %v3966_v42 = vpop.permute.xlu1 %3965  ;;  %v3555_v10 = vpack.c.bf16 %v1213_v29, %v1209_v30  ;;  %v1215_v9 = vsel %vm1199_vm9, %v3957_v48, %v3958_v47  ;;  %v3557_v11 = vpack.c.bf16 %v1212_v57, %v1208_v62 }
 0x222   : > { %v3968_v32 = vunpack.i.h.bf16 %v3966_v42  ;;  %v3967_v18 = vunpack.i.l.bf16 %v3966_v42  ;;  %v3961_v12 = vpop.permute.xlu0 %3960  ;;  %v3571_v14 = vpack.c.bf16 %v1215_v9, %v1211_v58  ;;  %v3573_v0 = vpack.c.bf16 %v1214_v33, %v1210_v24 }
 0x223   : > { %v3963_v15 = vunpack.i.h.bf16 %v3961_v12  ;;  %v3962_v26 = vunpack.i.l.bf16 %v3961_v12  ;;  %3556 = vmatprep.subr.bf16.mxu0 %v3555_v10  ;;  %2230 = vrot.lane.b32.xlu1 %v2223_v22, %s4525_s7  ;;  %v2361_v29 = vrot.slane %v2348_v61, %v4744_v3  ;;  %v2365_v58 = vrot.slane %v2348_v61, %v4748_v5  ;;  %v870_v3 = vld [vmem:[#allocation7] sm:$0xff] }
 0x224   : > { %3572 = vmatprep.subr.bf16.mxu1 %v3571_v14  ;;  %3558 = vmatpush1.bf16.msra.mxu0 %v3557_v11  ;;  %v1223_v39 = vsel %vm1199_vm9, %v3967_v18, %v3968_v32 }
 0x225   : > { %v1222_v2 = vsel %vm1199_vm9, %v3963_v15, %v3967_v18  ;;  %v1220_v19 = vsel %vm1199_vm9, %v3833_v31, %v3962_v26  ;;  %3574 = vmatpush1.bf16.msra.mxu1 %v3573_v0  ;;  %v3971_v50 = vpop.permute.xlu1 %3970  ;;  %v1221_v25 = vsel %vm1199_vm9, %v3962_v26, %v3963_v15  ;;  %v3575_v52 = vpack.c.bf16 %v1223_v39, %v1219_v27  ;;  %v5367_v18 = vld [vmem:[#allocation2] sm:$0xff] }
 0x226   : > { %v3976_v28 = vpop.permute.xlu0 %3975  ;;  %v3559_v36 = vpack.c.bf16 %v1221_v25, %v1217_v56  ;;  %v3561_v13 = vpack.c.bf16 %v1220_v19, %v1216_v38  ;;  %2295 = vrot.lane.b32.xlu0 %v2282_v46, %s4526_s12  ;;  %v3973_v55 = vunpack.i.h.bf16 %v3971_v50  ;;  %v3972_v49 = vunpack.i.l.bf16 %v3971_v50 }
 0x227   : > { %3576 = vmatprep.subr.bf16.mxu1 %v3575_v52  ;;  %v3577_v34 = vpack.c.bf16 %v1222_v2, %v1218_v8  ;;  %2297 = vrot.lane.b32.xlu1 %v2286_v60, %s4526_s12  ;;  %v3978_v59 = vunpack.i.h.bf16 %v3976_v28  ;;  %v3977_v23 = vunpack.i.l.bf16 %v3976_v28 }
 0x228   : > { %3560 = vmatprep.subr.bf16.mxu0 %v3559_v36  ;;  %v1224_v43 = vsel %vm1199_vm9, %v3837_v35, %v3972_v49  ;;  %v1225_v17 = vsel %vm1199_vm9, %v3972_v49, %v3973_v55 }
 0x229   : > { %3562 = vmatpush1.bf16.msra.mxu0 %v3561_v13  ;;  %3578 = vmatpush1.bf16.msra.mxu1 %v3577_v34  ;;  %v3981_v16 = vpop.permute.xlu1 %3980  ;;  %v1226_v7 = vsel %vm1199_vm9, %v3973_v55, %v3977_v23  ;;  %v1227_v46 = vsel %vm1199_vm9, %v3977_v23, %v3978_v59 }
 0x22a   : > { %v3983_v37 = vunpack.i.h.bf16 %v3981_v16  ;;  %v3982_v53 = vunpack.i.l.bf16 %v3981_v16  ;;  %v3986_v40 = vpop.permute.xlu0 %3985  ;;  %2299 = vrot.lane.b32.xlu0 %v2290_v45, %s4526_s12 }
 0x22b   : > { %v3988_v56 = vunpack.i.h.bf16 %v3986_v40  ;;  %v3987_v44 = vunpack.i.l.bf16 %v3986_v40  ;;  %2301 = vrot.lane.b32.xlu1 %v2294_v1, %s4526_s12 }
 0x22c   : > { %v1228_v21 = vsel %vm1199_vm9, %v3838_v54, %v3982_v53  ;;  %v1229_v22 = vsel %vm1199_vm9, %v3982_v53, %v3983_v37 }
 0x22d   : > { %v1230_v4 = vsel %vm1199_vm9, %v3983_v37, %v3987_v44  ;;  %v1194_v62 = vpop.permute.xlu1 %1193  ;;  %v3563_v6 = vpack.c.bf16 %v1229_v22, %v1225_v17  ;;  %v1231_v47 = vsel %vm1199_vm9, %v3987_v44, %v3988_v56  ;;  %v3565_v48 = vpack.c.bf16 %v1228_v21, %v1224_v43 }
 0x22e   : > { %v1192_v30 = vpop.permute.xlu0 %1191  ;;  %v3579_v24 = vpack.c.bf16 %v1231_v47, %v1227_v46  ;;  %v3581_v57 = vpack.c.bf16 %v1230_v4, %v1226_v7  ;;  %2366 = vrot.lane.b32.xlu0 %v2353_v51, %s4527_s13 }
 0x22f   : > { %3564 = vmatprep.subr.bf16.mxu0 %v3563_v6  ;;  %2368 = vrot.lane.b32.xlu1 %v2357_v20, %s4527_s13  ;;  %v1233_v33 = vsel %vm1199_vm9, %v1192_v30, %v1194_v62 }
 0x230   : > { %3580 = vmatprep.subr.bf16.mxu1 %v3579_v24  ;;  %3566 = vmatpush1.bf16.msra.mxu0 %v3565_v48 }
 0x231   : > { %3582 = vmatpush1.bf16.msra.mxu1 %v3581_v57  ;;  %v1198_v42 = vpop.permute.xlu1 %1197  ;;  %1291 = vmatprep.subr.mxu0 %v1233_v33 }
 0x232   : > { %v1196_v10 = vpop.permute.xlu0 %1195  ;;  %2370 = vrot.lane.b32.xlu0 %v2361_v29, %s4527_s13 }
 0x233   : > { %v1235_v9 = vsel %vm1199_vm9, %v1196_v10, %v1198_v42  ;;  %v1234_v11 = vsel %vm1199_vm9, %v1194_v62, %v1196_v10  ;;  %2372 = vrot.lane.b32.xlu1 %v2365_v58, %s4527_s13  ;;  %v3847_v10 = vunpack.i.l.bf16 %v5020_v41 }
 0x234   : > { %1362 = vmatprep.subr.mxu1 %v1235_v9 }
 0x235   : > { %1363 = vmatpush1.msra.mxu1 %v1234_v11  ;;  %v3996_v5 = vpop.permute.xlu1 %3995 }
 0x236   : > { %v3991_v32 = vpop.permute.xlu0 %3990  ;;  %3502 = vmatmul.mubr.msk.f32.vlgmr.msra.gmra.mrb[0].mxu1 %vm918_vm8, %v870_v3  ;;  %v3998_v12 = vunpack.i.h.bf16 %v3996_v5  ;;  %v3997_v14 = vunpack.i.l.bf16 %v3996_v5 }
 0x237   : > { %1809 = vmatprep.mubr.f32.mxu1 %v5367_v18  ;;  %v3993_v0 = vunpack.i.h.bf16 %v3991_v32  ;;  %v3992_v39 = vunpack.i.l.bf16 %v3991_v32  ;;  %v3843_v32 = vunpack.i.h.bf16 %v5022_v63 }
 0x238   : > { %v1602_v2 = vsel %vm1199_vm9, %v3997_v14, %v3998_v12  ;;  %v3842_v12 = vunpack.i.l.bf16 %v5022_v63 }
 0x239   : > { %v4006_v31 = vpop.permute.xlu1 %4005  ;;  %v1601_v50 = vsel %vm1199_vm9, %v3993_v0, %v3997_v14  ;;  %v1600_v1 = vsel %vm1199_vm9, %v3992_v39, %v3993_v0 }
 0x23a   : > { %v4008_v15 = vunpack.i.h.bf16 %v4006_v31  ;;  %v4007_v26 = vunpack.i.l.bf16 %v4006_v31  ;;  %v4001_v60 = vpop.permute.xlu0 %4000 }
 0x23b   : > { %v4003_v38 = vunpack.i.h.bf16 %v4001_v60  ;;  %v4002_v27 = vunpack.i.l.bf16 %v4001_v60  ;;  %v3848_v60 = vunpack.i.h.bf16 %v5020_v41 }
 0x23c   : > { %v1606_v19 = vsel %vm1199_vm9, %v4007_v26, %v4008_v15 }
 0x23d   : > { %v1605_v25 = vsel %vm1199_vm9, %v4003_v38, %v4007_v26  ;;  %v4016_v52 = vpop.permute.xlu1 %4015  ;;  %v3599_v8 = vpack.c.bf16 %v1606_v19, %v1602_v2  ;;  %v1604_v45 = vsel %vm1199_vm9, %v4002_v27, %v4003_v38 }
 0x23e   : > { %v4017_v28 = vunpack.i.l.bf16 %v4016_v52  ;;  %v4011_v36 = vpop.permute.xlu0 %4010  ;;  %v3601_v13 = vpack.c.bf16 %v1605_v25, %v1601_v50  ;;  %v3583_v54 = vpack.c.bf16 %v1604_v45, %v1600_v1  ;;  %v4018_v20 = vunpack.i.h.bf16 %v4016_v52 }
 0x23f   : > { %v4013_v55 = vunpack.i.h.bf16 %v4011_v36  ;;  %v4012_v49 = vunpack.i.l.bf16 %v4011_v36  ;;  %3600 = vmatprep.subr.bf16.mxu1 %v3599_v8  ;;  %v1617_v25 = vsel %vm1199_vm9, %v3842_v12, %v3843_v32 }
 0x240   : > { %v1603_v34 = vsel %vm1199_vm9, %v4017_v28, %v4002_v27  ;;  %3602 = vmatpush1.bf16.msra.mxu1 %v3601_v13 }
 0x241   : > { %v1599_v61 = vsel %vm1199_vm9, %v4013_v55, %v3992_v39  ;;  %v4026_v59 = vpop.permute.xlu1 %4025  ;;  %v1232_v23 = vsel %vm1199_vm9, %v4012_v49, %v1192_v30 }
 0x242   : > { %v4021_v35 = vpop.permute.xlu0 %4020  ;;  %1292 = vmatpush1.msra.mxu0 %v1232_v23  ;;  %v3585_v16 = vpack.c.bf16 %v1603_v34, %v1599_v61  ;;  %v4027_v37 = vunpack.i.l.bf16 %v4026_v59  ;;  %v4028_v44 = vunpack.i.h.bf16 %v4026_v59 }
 0x243   : > { %3584 = vmatprep.subr.bf16.mxu0 %v3583_v54  ;;  %3501 = vmatmul.mubr.msk.f32.vlgmr.msra.gmra.mrb[0].mxu0 %vm918_vm8, %v870_v3  ;;  %v4023_v53 = vunpack.i.h.bf16 %v4021_v35  ;;  %v4022_v40 = vunpack.i.l.bf16 %v4021_v35 }
 0x244   : > { %3586 = vmatpush1.bf16.msra.mxu0 %v3585_v16  ;;  %1738 = vmatprep.mubr.f32.mxu0 %v5367_v18 }
 0x245   : > { %v4036_v51 = vpop.permute.xlu1 %4035  ;;  %v1608_v21 = vsel %vm1199_vm9, %v4018_v20, %v4022_v40  ;;  %v1610_v22 = vsel %vm1199_vm9, %v4023_v53, %v4027_v37  ;;  %v1609_v48 = vsel %vm1199_vm9, %v4022_v40, %v4023_v53 }
 0x246   : > { %v4037_v43 = vunpack.i.l.bf16 %v4036_v51  ;;  %v4031_v56 = vpop.permute.xlu0 %4030  ;;  %v4038_v46 = vunpack.i.h.bf16 %v4036_v51 }
 0x247   : > { %v4033_v17 = vunpack.i.h.bf16 %v4031_v56  ;;  %v4032_v7 = vunpack.i.l.bf16 %v4031_v56 }
 0x248   : > { %v1607_v9 = vsel %vm1199_vm9, %v4038_v46, %v4018_v20 }
 0x249   : > { %v1613_v4 = vsel %vm1199_vm9, %v4032_v7, %v4033_v17  ;;  %v4051_v62 = vpop.permute.xlu1 %4050  ;;  %v1612_v6 = vsel %vm1199_vm9, %v4028_v44, %v4032_v7  ;;  %v1614_v47 = vsel %vm1199_vm9, %v4033_v17, %v4037_v43 }
 0x24a   : > { %v4041_v30 = vpop.permute.xlu0 %4040  ;;  %v3587_v24 = vpack.c.bf16 %v1612_v6, %v1608_v21  ;;  %v3603_v57 = vpack.c.bf16 %v1614_v47, %v1610_v22  ;;  %v3605_v58 = vpack.c.bf16 %v1613_v4, %v1609_v48  ;;  %v4053_v33 = vunpack.i.h.bf16 %v4051_v62 }
 0x24b   : > { %v4042_v29 = vunpack.i.l.bf16 %v4041_v30  ;;  %v4052_v42 = vunpack.i.l.bf16 %v4051_v62  ;;  %v4043_v11 = vunpack.i.h.bf16 %v4041_v30  ;;  %v1418_v30 = vld [vmem:[#allocation7 + $0x10] sm:$0xff] }
 0x24c   : > { %3588 = vmatprep.subr.bf16.mxu0 %v3587_v24  ;;  %3604 = vmatprep.subr.bf16.mxu1 %v3603_v57  ;;  %v1622_v27 = vsel %vm1199_vm9, %v4053_v33, %v3847_v10 }
 0x24d   : > { %v1611_v3 = vsel %vm1199_vm9, %v4042_v29, %v4028_v44  ;;  %3606 = vmatpush1.bf16.msra.mxu1 %v3605_v58  ;;  %v4056_v5 = vpop.permute.xlu1 %4055  ;;  %v1621_v38 = vsel %vm1199_vm9, %v4052_v42, %v4053_v33  ;;  %v1616_v19 = vsel %vm1199_vm9, %v4043_v11, %v3842_v12  ;;  %v1615_v52 = vsel %vm1199_vm9, %v3848_v60, %v4043_v11 }
 0x24e   : > { %v4057_v14 = vunpack.i.l.bf16 %v4056_v5  ;;  %v4046_v0 = vpop.permute.xlu0 %4045  ;;  %v3589_v31 = vpack.c.bf16 %v1611_v3, %v1607_v9  ;;  %v3609_v13 = vpack.c.bf16 %v1621_v38, %v1617_v25  ;;  %v4058_v1 = vunpack.i.h.bf16 %v4056_v5 }
 0x24f   : > { %v4048_v15 = vunpack.i.h.bf16 %v4046_v0  ;;  %v4047_v26 = vunpack.i.l.bf16 %v4046_v0 }
 0x250   : > { %3590 = vmatpush1.bf16.msra.mxu0 %v3589_v31 }
 0x251   : > { %v1619_v39 = vsel %vm1199_vm9, %v4057_v14, %v4048_v15  ;;  %v4066_v2 = vpop.permute.xlu1 %4065  ;;  %v1620_v50 = vsel %vm1199_vm9, %v4048_v15, %v4052_v42  ;;  %v1618_v63 = vsel %vm1199_vm9, %v3843_v32, %v4047_v26 }
 0x252   : > { %v4061_v8 = vpop.permute.xlu0 %4060  ;;  %v3591_v41 = vpack.c.bf16 %v1620_v50, %v1616_v19  ;;  %v3607_v28 = vpack.c.bf16 %v1622_v27, %v1618_v63  ;;  %v3593_v36 = vpack.c.bf16 %v1619_v39, %v1615_v52  ;;  %v4067_v49 = vunpack.i.l.bf16 %v4066_v2 }
 0x253   : > { %v4063_v45 = vunpack.i.h.bf16 %v4061_v8  ;;  %v4062_v55 = vunpack.i.l.bf16 %v4061_v8  ;;  %v4068_v23 = vunpack.i.h.bf16 %v4066_v2  ;;  %v4080_v63 = vpack.i.bf16 %v5367_v18, %v5367_v18 }
 0x254   : > { %3592 = vmatprep.subr.bf16.mxu0 %v3591_v41  ;;  %3608 = vmatprep.subr.bf16.mxu1 %v3607_v28 }
 0x255   : > { %3594 = vmatpush1.bf16.msra.mxu0 %v3593_v36  ;;  %3610 = vmatpush1.bf16.msra.mxu1 %v3609_v13  ;;  %v4076_v34 = vpop.permute.xlu1 %4075  ;;  %v1625_v37 = vsel %vm1199_vm9, %v4062_v55, %v4063_v45  ;;  %v1624_v53 = vsel %vm1199_vm9, %v4058_v1, %v4062_v55  ;;  %v1626_v43 = vsel %vm1199_vm9, %v4063_v45, %v4067_v49 }
 0x256   : > { %v4077_v61 = vunpack.i.l.bf16 %v4076_v34  ;;  %v4071_v59 = vpop.permute.xlu0 %4070  ;;  %v4078_v54 = vunpack.i.h.bf16 %v4076_v34 }
 0x257   : > { %v4073_v35 = vunpack.i.h.bf16 %v4071_v59  ;;  %v4072_v16 = vunpack.i.l.bf16 %v4071_v59 }
 0x258   : > { %v1623_v22 = vsel %vm1199_vm9, %v4078_v54, %v4058_v1 }
 0x259   : > { %v1629_v40 = vsel %vm1199_vm9, %v4072_v16, %v4073_v35  ;;  %v1592_v51 = vpop.permute.xlu1 %1591  ;;  %v1628_v20 = vsel %vm1199_vm9, %v4068_v23, %v4072_v16  ;;  %v1630_v56 = vsel %vm1199_vm9, %v4073_v35, %v4077_v61 }
 0x25a   : > { %v1580_v44 = vpop.permute.xlu0 %1579  ;;  %v3595_v17 = vpack.c.bf16 %v1628_v20, %v1624_v53  ;;  %v3611_v7 = vpack.c.bf16 %v1630_v56, %v1626_v43  ;;  %v3613_v21 = vpack.c.bf16 %v1629_v40, %v1625_v37 }
 0x25b   : > { %v1627_v46 = vsel %vm1199_vm9, %v1580_v44, %v4068_v23 }
 0x25c   : > { %v3597_v4 = vpack.c.bf16 %v1627_v46, %v1623_v22  ;;  %3596 = vmatprep.subr.bf16.mxu0 %v3595_v17  ;;  %3612 = vmatprep.subr.bf16.mxu1 %v3611_v7 }
 0x25d   : > { %3614 = vmatpush1.bf16.msra.mxu1 %v3613_v21  ;;  %v1596_v62 = vpop.permute.xlu1 %1595 }
 0x25e   : > { %v1594_v6 = vpop.permute.xlu0 %1593  ;;  %3598 = vmatpush1.bf16.msra.mxu0 %v3597_v4 }
 0x25f   : > { %v1632_v47 = vsel %vm1199_vm9, %v1592_v51, %v1594_v6  ;;  %v1633_v58 = vsel %vm1199_vm9, %v1594_v6, %v1596_v62 }
 0x260   : > { %1690 = vmatprep.subr.mxu0 %v1632_v47 }
 0x261   : > { %v1590_v48 = vpop.permute.xlu1 %1589 }
 0x262   : > { %v1631_v24 = vsel %vm1199_vm9, %v1590_v48, %v1592_v51  ;;  %v1598_v57 = vpop.permute.xlu0 %1597 }
 0x263   : > { %1691 = vmatpush1.msra.mxu0 %v1631_v24  ;;  %v1634_v29 = vsel %vm1199_vm9, %v1596_v62, %v1598_v57 }
 0x264   : > { %1761 = vmatprep.subr.mxu1 %v1634_v29  ;;  %3503 = vmatmul.mubr.msk.f32.vlgmr.msra.gmra.mrb[0].mxu0 %vm918_vm8, %v1418_v30 }
 0x265   : > { %1762 = vmatpush1.msra.mxu1 %v1633_v58  ;;  %v5414_v33 = vpop.permute.xlu1 %1861  ;;  %2530 = vmatprep.mubr.f32.mxu0 %v5367_v18 }
 0x266   : > { %3504 = vmatmul.mubr.msk.f32.vlgmr.msra.gmra.mrb[0].mxu1 %vm918_vm8, %v1418_v30  ;;  %v1877_v46 = vmul.f32 %v5367_v18, %v5414_v33 }
 0x267   : > { %2601 = vmatprep.mubr.f32.mxu1 %v5367_v18 }
 0x269   : > { %v5419_v42 = vpop.permute.xlu1 %1863 }
 0x26a   : > { %v1869_v17 = vsel %vm310_vm0, %v5414_v33, %v5419_v42 }
 0x26d   : > { %v5421_v10 = vpop.permute.xlu1 %1867 }
 0x271   : > { %v5423_v9 = vpop.permute.xlu1 %1934 }
 0x273   : > { %v1824_v25 = vpop.permute.xlu0 %1823 }
 0x275   : > { %v5425_v11 = vpop.permute.xlu1 %1938 }
 0x277   : > { %v5466_v52 = vpop.permute.xlu0 %1865 }
 0x279   : > { %v5427_v3 = vpop.permute.xlu1 %2005 }
 0x27b   : > { %v1933_v8 = vpop.permute.xlu0 %1932 }
 0x27c   : > { %v1940_v4 = vsel %vm384_vm1, %v1933_v8, %v5423_v9 }
 0x27d   : > { %v5429_v5 = vpop.permute.xlu1 %2009 }
 0x27f   : > { %v5468_v41 = vpop.permute.xlu0 %1936 }
 0x281   : > { %v5431_v32 = vpop.permute.xlu1 %2076 }
 0x283   : > { %v2004_v28 = vpop.permute.xlu0 %2003 }
 0x284   : > { %v2011_v62 = vsel %vm458_vm2, %v2004_v28, %v5427_v3 }
 0x285   : > { %v5433_v12 = vpop.permute.xlu1 %2080 }
 0x287   : > { %v5470_v36 = vpop.permute.xlu0 %2007 }
 0x289   : > { %v5435_v14 = vpop.permute.xlu1 %2155 }
 0x28b   : > { %v2075_v13 = vpop.permute.xlu0 %2074 }
 0x28d   : > { %v5437_v0 = vpop.permute.xlu1 %2159 }
 0x28e   : > { %v2173_v31 = vmul.f32 %v5367_v18, %v5437_v0 }
 0x28f   : > { %v5472_v45 = vpop.permute.xlu0 %2078 }
 0x290   : > { %2187 = vrot.lane.b32.xlu0 %v2173_v31, %s4523_s6 }
 0x291   : > { %v5442_v15 = vpop.permute.xlu1 %2226 }
 0x293   : > { %v5474_v55 = vpop.permute.xlu0 %2153 }
 0x295   : > { %v2231_v26 = vpop.permute.xlu1 %2230 }
 0x296   : > { %v2244_v60 = vmul.f32 %v5367_v18, %v2231_v26 }
 0x297   : > { %v2158_v49 = vpop.permute.xlu0 %2157 }
 0x298   : > { %2258 = vrot.lane.b32.xlu1 %v2244_v60, %s4522_s30  ;;  %v2162_v47 = vsel %vm561_vm4, %v5435_v14, %v2158_v49  ;;  %v2163_v29 = vsel %vm561_vm4, %v2158_v49, %v5437_v0  ;;  %v1948_v60 = vmul.f32 %v5367_v18, %v1933_v8  ;;  %v2082_v0 = vsel %vm532_vm3, %v2075_v13, %v5431_v32 }
 0x299   : > { %v5446_v38 = vpop.permute.xlu1 %2297 }
 0x29b   : > { %v5476_v34 = vpop.permute.xlu0 %2224 }
 0x29d   : > { %v5448_v27 = vpop.permute.xlu1 %2301 }
 0x29e   : > { %v2315_v39 = vmul.f32 %v5367_v18, %v5448_v27 }
 0x29f   : > { %v2229_v1 = vpop.permute.xlu0 %2228 }
 0x2a0   : > { %2329 = vrot.lane.b32.xlu0 %v2315_v39, %s4521_s23  ;;  %v2233_v6 = vsel %vm487_vm5, %v5442_v15, %v2229_v1  ;;  %v2234_v48 = vsel %vm487_vm5, %v2229_v1, %v2231_v26  ;;  %v2019_v39 = vmul.f32 %v5367_v18, %v2004_v28 }
 0x2a1   : > { %v5453_v2 = vpop.permute.xlu1 %2368 }
 0x2a3   : > { %v5487_v56 = vpop.permute.xlu0 %2295 }
 0x2a4   : > { %4081 = vrot.lane.b32.xlu0 %v4080_v63, %s4528_s24 }
 0x2a5   : > { %v5455_v19 = vpop.permute.xlu1 %2372 }
 0x2a6   : > { %v2386_v50 = vmul.f32 %v5367_v18, %v5455_v19 }
 0x2a7   : > { %v2300_v30 = vpop.permute.xlu0 %2299 }
 0x2a8   : > { %2400 = vrot.lane.b32.xlu1 %v2386_v50, %s4520_s21  ;;  %4091 = vrot.lane.b32.xlu0 %v4080_v63, %s4528_s24 }
 0x2ac   : > { %4086 = vrot.lane.b32.xlu1 %v4080_v63, %s4528_s24 }
 0x2b0   : > { %4096 = vrot.lane.b32.xlu1 %v4080_v63, %s4528_s24  ;;  %v2304_v63 = vsel %vm413_vm6, %v5446_v38, %v2300_v30 }
 0x337   : > { %v1740_v61 = vpop.f32.mrb[0].mxu0 }
 0x338   : > { %v1826_v59 = vadd.f32 %v1824_v25, %v1740_v61  ;;  %v1742_v23 = vpop.f32.mrb[1].mxu0 }
 0x339   : > { %v1827_v54 = vadd.f32 %v1824_v25, %v1742_v23  ;;  %v1811_v35 = vpop.f32.mrb[0].mxu1 }
 0x33a   : > { %v5478_v16 = vmax.f32 %v1826_v59, 0.0  ;;  %v1828_v37 = vadd.f32 %v1824_v25, %v1811_v35  ;;  %v1813_v53 = vpop.f32.mrb[1].mxu1 }
 0x33b   : > { %v5480_v40 = vmax.f32 %v1827_v54, 0.0  ;;  %v1829_v51 = vadd.f32 %v1824_v25, %v1813_v53  ;;  %v2305_v25 = vsel %vm413_vm6, %v2300_v30, %v5448_v27  ;;  %v2090_v27 = vmul.f32 %v5367_v18, %v2075_v13  ;;  %v2367_v54 = vpop.permute.xlu0 %2366 }
 0x33c   : > { %1834 = vst [vmem:[#allocation2 + $0x8] sm:$0xff] %v5478_v16  ;;  %v5483_v20 = vmax.f32 %v1828_v37, 0.0  ;;  %v4100_v43 = vpack.i.bf16 %v5478_v16, %v5367_v18  ;;  %v1878_v22 = vmul.f32 %v1869_v17, %v5478_v16  ;;  %v1949_v24 = vmul.f32 %v1940_v4, %v5478_v16 }
 0x33d   : > { %1835 = vst [vmem:[#allocation2 + $0x10] sm:$0xff] %v5480_v40  ;;  %v5490_v44 = vmax.f32 %v1829_v51, 0.0  ;;  %v4105_v21 = vpack.i.bf16 %v5480_v40, %v5478_v16  ;;  %v2020_v33 = vmul.f32 %v2011_v62, %v5478_v16  ;;  %v2091_v49 = vmul.f32 %v2082_v0, %v5478_v16 }
 0x33e   : > { %1836 = vst [vmem:[#allocation2 + $0x18] sm:$0xff] %v5483_v20  ;;  %4101 = vrot.lane.b32.xlu0 %v4100_v43, %s4528_s24  ;;  %v5518_v57 = vmul.f32 %v2233_v6, %v5483_v20  ;;  %v4120_v58 = vpack.i.bf16 %v1878_v22, %v1877_v46  ;;  %v5530_v26 = vmul.f32 %v2162_v47, %v5483_v20 }
 0x33f   : > { %1837 = vst [vmem:[#allocation2 + $0x20] sm:$0xff] %v5490_v44  ;;  %v4110_v7 = vpack.i.bf16 %v5490_v44, %v5483_v20  ;;  %v5524_v31 = vmul.f32 %v2234_v48, %v5490_v44  ;;  %v5533_v50 = vmul.f32 %v2163_v29, %v5490_v44  ;;  %v4125_v28 = vpack.i.bf16 %v1949_v24, %v1948_v60 }
 0x340   : > { %v5548_v61 = vmul.f32 %v2304_v63, %v5483_v20  ;;  %v4130_v59 = vpack.i.bf16 %v2020_v33, %v2019_v39  ;;  %v5551_v23 = vmul.f32 %v2305_v25, %v5490_v44  ;;  %v1941_v37 = vsel %vm384_vm1, %v5423_v9, %v5468_v41 }
 0x341   : > { %4111 = vrot.lane.b32.xlu1 %v4110_v7, %s4528_s24  ;;  %v4175_v8 = vpack.i.bf16 %v5524_v31, %v5518_v57  ;;  %v4165_v1 = vpack.i.bf16 %v5533_v50, %v5530_v26  ;;  %v1942_v53 = vsel %vm384_vm1, %v5468_v41, %v5425_v11  ;;  %v4135_v51 = vpack.i.bf16 %v2091_v49, %v2090_v27  ;;  %v5653_v26 = vpop.permute.xlu1 %2258 }
 0x342   : > { %4106 = vrot.lane.b32.xlu0 %v4105_v21, %s4528_s24  ;;  %v4185_v35 = vpack.i.bf16 %v5551_v23, %v5548_v61  ;;  %v1881_v13 = vmul.f32 %v5421_v10, %v5490_v44  ;;  %v1950_v43 = vmul.f32 %v1941_v37, %v5480_v40  ;;  %v1951_v17 = vmul.f32 %v1942_v53, %v5483_v20 }
 0x343   : > { %v2382_v21 = vmul.f32 %v2367_v54, %v5478_v16  ;;  %v1870_v41 = vsel %vm310_vm0, %v5419_v42, %v5466_v52  ;;  %v1871_v22 = vsel %vm310_vm0, %v5466_v52, %v5421_v10  ;;  %v2083_v46 = vsel %vm532_vm3, %v5431_v32, %v5472_v45 }
 0x344   : > { %v4145_v9 = vpack.i.bf16 %v1951_v17, %v1950_v43  ;;  %v2084_v62 = vsel %vm532_vm3, %v5472_v45, %v5433_v12  ;;  %v1879_v42 = vmul.f32 %v1870_v41, %v5480_v40  ;;  %v1880_v47 = vmul.f32 %v1871_v22, %v5483_v20 }
 0x345   : > { %4116 = vrot.lane.b32.xlu1 %v4110_v7, %s4528_s24  ;;  %v2371_v7 = vpop.permute.xlu0 %2370  ;;  %v2023_v10 = vmul.f32 %v5429_v5, %v5490_v44  ;;  %v2092_v32 = vmul.f32 %v2083_v46, %v5480_v40  ;;  %v2093_v52 = vmul.f32 %v2084_v62, %v5483_v20  ;;  %v2161_v45 = vsel %vm561_vm4, %v5474_v55, %v5435_v14 }
 0x346   : > { %4121 = vrot.lane.b32.xlu0 %v4120_v58, %s4527_s13  ;;  %v2375_v4 = vsel %vm339_vm7, %v5453_v2, %v2371_v7  ;;  %v4140_v48 = vpack.i.bf16 %v1880_v47, %v1879_v42  ;;  %v2169_v24 = vmul.f32 %v5474_v55, %v5478_v16  ;;  %v2170_v57 = vmul.f32 %v2161_v45, %v5480_v40 }
 0x347   : > { %v2384_v6 = vmul.f32 %v2375_v4, %v5483_v20  ;;  %v4155_v30 = vpack.i.bf16 %v2093_v52, %v2092_v32  ;;  %v2012_v29 = vsel %vm458_vm2, %v5427_v3, %v5470_v36  ;;  %v2013_v58 = vsel %vm458_vm2, %v5470_v36, %v5429_v5 }
 0x348   : > { %v1952_v14 = vmul.f32 %v5425_v11, %v5490_v44  ;;  %v2021_v33 = vmul.f32 %v2012_v29, %v5480_v40  ;;  %v2022_v55 = vmul.f32 %v2013_v58, %v5483_v20  ;;  %v4160_v31 = vpack.i.bf16 %v2170_v57, %v2169_v24 }
 0x349   : > { %4126 = vrot.lane.b32.xlu1 %v4125_v28, %s4526_s12  ;;  %v2303_v3 = vsel %vm413_vm6, %v5487_v56, %v5446_v38  ;;  %v2311_v5 = vmul.f32 %v5487_v56, %v5478_v16  ;;  %v2094_v11 = vmul.f32 %v5433_v12, %v5490_v44  ;;  %v2232_v38 = vsel %vm487_vm5, %v5476_v34, %v5442_v15 }
 0x34a   : > { %4131 = vrot.lane.b32.xlu0 %v4130_v59, %s4525_s7  ;;  %v4150_v60 = vpack.i.bf16 %v2022_v55, %v2021_v33  ;;  %v2312_v36 = vmul.f32 %v2303_v3, %v5480_v40  ;;  %v2374_v56 = vsel %vm339_vm7, %v2367_v54, %v5453_v2  ;;  %v2240_v0 = vmul.f32 %v5476_v34, %v5478_v16  ;;  %v5651_v34 = vpop.permute.xlu0 %2187 }
 0x34b   : > { %v2241_v63 = vmul.f32 %v2232_v38, %v5480_v40  ;;  %v2383_v25 = vmul.f32 %v2374_v56, %v5480_v40  ;;  %v2376_v12 = vsel %vm339_vm7, %v2371_v7, %v5455_v19 }
 0x34c   : > { %v4180_v39 = vpack.i.bf16 %v2312_v36, %v2311_v5  ;;  %v2385_v2 = vmul.f32 %v2376_v12, %v5490_v44 }
 0x34d   : > { %4136 = vrot.lane.b32.xlu1 %v4135_v51, %s4524_s25  ;;  %v4170_v15 = vpack.i.bf16 %v2241_v63, %v2240_v0 }
 0x34e   : > { %1895 = vrot.lane.b32.xlu0 %v1881_v13, %s4527_s13  ;;  %v5655_v50 = vpop.permute.xlu0 %2329 }
 0x351   : > { %2392 = vrot.lane.b32.xlu1 %v2382_v21, %s4520_s21 }
 0x352   : > { %4146 = vrot.lane.b32.xlu0 %v4145_v9, %s4526_s12  ;;  %v5659_v19 = vpop.permute.xlu0 %4081 }
 0x355   : > { %2396 = vrot.lane.b32.xlu1 %v2384_v6, %s4520_s21 }
 0x356   : > { %2037 = vrot.lane.b32.xlu0 %v2023_v10, %s4525_s7  ;;  %v5663_v49 = vpop.permute.xlu0 %4091 }
 0x359   : > { %4141 = vrot.lane.b32.xlu1 %v4140_v48, %s4527_s13 }
 0x35a   : > { %4156 = vrot.lane.b32.xlu0 %v4155_v30, %s4524_s25 }
 0x35d   : > { %1966 = vrot.lane.b32.xlu1 %v1952_v14, %s4526_s12 }
 0x35e   : > { %4161 = vrot.lane.b32.xlu0 %v4160_v31, %s4523_s6 }
 0x361   : > { %4151 = vrot.lane.b32.xlu1 %v4150_v60, %s4525_s7  ;;  %s4530_s7 = smov [#allocation10]  }
 0x362   : > { %4176 = vrot.lane.b32.xlu0 %v4175_v8, %s4522_s30  ;;  %v5657_v8 = vpop.permute.xlu1 %2400  ;;  %s4444_s12 = sshll.u32 %s4530_s7, 4  ;;  %s4445_s12 = int_to_ptr.vmem [resolvable:$false] %s4444_s12 }
 0x363   : > { %s4446_s13 = scalar_lea.vmem %s4445_s12, 1024 }
 0x365   : > { %2108 = vrot.lane.b32.xlu1 %v2094_v11, %s4524_s25 }
 0x366   : > { %4181 = vrot.lane.b32.xlu0 %v4180_v39, %s4521_s23  ;;  %v5661_v28 = vpop.permute.xlu1 %4086 }
 0x369   : > { %4166 = vrot.lane.b32.xlu1 %v4165_v1, %s4523_s6  ;;  %s5992_s6 = scalar_lea.hbm %s6040_s4, %s3518_s9 }
 0x36a   : > { %2394 = vrot.lane.b32.xlu0 %v2383_v25, %s4520_s21  ;;  %v5665_v1 = vpop.permute.xlu1 %4096 }
 0x36d   : > { %4171 = vrot.lane.b32.xlu1 %v4170_v15, %s4522_s30 }
 0x36e   : > { %2398 = vrot.lane.b32.xlu0 %v2385_v2, %s4520_s21  ;;  %s3397_s21 = sshll.u32 %s242_s10, 4  ;;  %s5994_s21 = int_to_ptr.vmem [resolvable:$true] %s3397_s21 }
 0x36f   : > { %s4440_s25 = scalar_lea.vmem %s5994_s21, 512  ;;  %p4447_p5 = scmp.lt.s32.totalorder %s5994_s21, %s4445_s12 }
 0x370   : > { %p4441_p8 = scmp.ne.s32.totalorder %s5994_s21, %s4440_s25  ;;  %p4448_p9 = scmp.lt.s32.totalorder %s4446_s13, %s4440_s25 }
 0x371   : > { %4186 = vrot.lane.b32.xlu1 %v4185_v35, %s4521_s23 }
 0x372   : > { %p4442_p1 = pnand %p4441_p8, %p6054_p0  ;;  %p4449_p12 = por %p4448_p9, %p4447_p5 }
 0x374   : > { %p4443_p3 = pneg %p4442_p1 }
 0x376   : > { %p4450_p2 = pnand %p4449_p12, %p4443_p3 }
 0x3b0   : > { %v5667_v59 = vpop.permute.xlu0 %4101 }
 0x3b3   : > { %v5669_v61 = vpop.permute.xlu1 %4111 }
 0x3b4   : > { %v5671_v23 = vpop.permute.xlu0 %4106  ;;  %v4113_v27 = vunpack.i.l.bf16 %v5669_v61 }
 0x3b5   : > { %v4109_v54 = vunpack.i.h.bf16 %v5671_v23 }
 0x3b7   : > { %v5680_v35 = vsel %vm1199_vm9, %v4109_v54, %v4113_v27  ;;  %v5682_v37 = vpop.permute.xlu1 %4116 }
 0x3b8   : > { %v4122_v53 = vpop.permute.xlu0 %4121 }
 0x3b9   : > { %v4124_v51 = vunpack.i.h.bf16 %v4122_v53  ;;  %v4123_v13 = vunpack.i.l.bf16 %v4122_v53 }
 0x3bb   : > { %v1897_v43 = vsel %vm339_vm7, %v4123_v13, %v4124_v51  ;;  %v4127_v17 = vpop.permute.xlu1 %4126 }
 0x3bc   : > { %v4132_v7 = vpop.permute.xlu0 %4131  ;;  %v4190_v21 = vpack.i.bf16 %v1897_v43, %v5367_v18  ;;  %v4129_v30 = vunpack.i.h.bf16 %v4127_v17  ;;  %v4128_v24 = vunpack.i.l.bf16 %v4127_v17 }
 0x3bd   : > { %v4134_v9 = vunpack.i.h.bf16 %v4132_v7  ;;  %v4133_v41 = vunpack.i.l.bf16 %v4132_v7 }
 0x3be   : > { %4191 = vrot.lane.b32.xlu0 %v4190_v21, %s4528_s24  ;;  %v5704_v55 = vsel %vm413_vm6, %v4128_v24, %v4129_v30 }
 0x3bf   : > { %v5688_v22 = vsel %vm487_vm5, %v4133_v41, %v4134_v9  ;;  %v4137_v46 = vpop.permute.xlu1 %4136  ;;  %v3617_v25 = vpack.c.bf16 %v5704_v55, %v1897_v43 }
 0x3c0   : > { %v4139_v4 = vunpack.i.h.bf16 %v4137_v46  ;;  %v4138_v62 = vunpack.i.l.bf16 %v4137_v46  ;;  %v1896_v6 = vpop.permute.xlu0 %1895  ;;  %v4195_v42 = vpack.i.bf16 %v5688_v22, %v5367_v18 }
 0x3c2   : > { %v5693_v47 = vsel %vm561_vm4, %v4138_v62, %v4139_v4  ;;  %4196 = vrot.lane.b32.xlu1 %v4195_v42, %s4528_s24 }
 0x3c3   : > { %v5696_v10 = vpop.permute.xlu1 %2392  ;;  %v4200_v32 = vpack.i.bf16 %v5480_v40, %v5693_v47 }
 0x3c4   : > { %v4147_v52 = vpop.permute.xlu0 %4146 }
 0x3c5   : > { %4201 = vrot.lane.b32.xlu0 %v4200_v32, %s4528_s24  ;;  %v4148_v57 = vunpack.i.l.bf16 %v4147_v52  ;;  %v4149_v31 = vunpack.i.h.bf16 %v4147_v52 }
 0x3c7   : > { %v5701_v45 = vpop.permute.xlu1 %2396  ;;  %v5716_v36 = vsel %vm413_vm6, %v4129_v30, %v4148_v57  ;;  %v5730_v12 = vsel %vm413_vm6, %v4148_v57, %v4149_v31  ;;  %v3621_v57 = vpack.c.bf16 %v5693_v47, %v5688_v22 }
 0x3c8   : > { %v2038_v48 = vpop.permute.xlu0 %2037 }
 0x3cb   : > { %v4142_v29 = vpop.permute.xlu1 %4141 }
 0x3cc   : > { %v4144_v58 = vunpack.i.h.bf16 %v4142_v29  ;;  %v4143_v14 = vunpack.i.l.bf16 %v4142_v29  ;;  %v4157_v33 = vpop.permute.xlu0 %4156 }
 0x3cd   : > { %v4158_v2 = vunpack.i.l.bf16 %v4157_v33  ;;  %v4159_v21 = vunpack.i.h.bf16 %v4157_v33 }
 0x3ce   : > { %v5707_v3 = vsel %vm339_vm7, %v4144_v58, %v1896_v6  ;;  %v5710_v60 = vsel %vm339_vm7, %v4124_v51, %v4143_v14  ;;  %v5713_v5 = vsel %vm339_vm7, %v4143_v14, %v4144_v58 }
 0x3cf   : > { %v1967_v11 = vpop.permute.xlu1 %1966  ;;  %v4210_v39 = vpack.i.bf16 %v5707_v3, %v5713_v5  ;;  %v4205_v38 = vpack.i.bf16 %v5710_v60, %v1897_v43  ;;  %v3615_v56 = vpack.c.bf16 %v5716_v36, %v5710_v60  ;;  %v3633_v13 = vpack.c.bf16 %v5730_v12, %v5713_v5 }
 0x3d0   : > { %v5724_v0 = vsel %vm413_vm6, %v4149_v31, %v1967_v11  ;;  %v4162_v63 = vpop.permute.xlu0 %4161  ;;  %v4215_v43 = vpack.i.bf16 %v5716_v36, %v5704_v55  ;;  %v5752_v30 = vsel %vm561_vm4, %v4139_v4, %v4158_v2 }
 0x3d1   : > { %4211 = vrot.lane.b32.xlu1 %v4210_v39, %s4528_s24  ;;  %4206 = vrot.lane.b32.xlu0 %v4205_v38, %s4528_s24  ;;  %v3631_v15 = vpack.c.bf16 %v5724_v0, %v5707_v3  ;;  %v4220_v53 = vpack.i.bf16 %v5724_v0, %v5730_v12  ;;  %v4164_v58 = vunpack.i.h.bf16 %v4162_v63  ;;  %v4163_v14 = vunpack.i.l.bf16 %v4162_v63 }
 0x3d2   : > { %3616 = vmatprep.subr.bf16.mxu0 %v3615_v56  ;;  %v4235_v31 = vpack.i.bf16 %v5752_v30, %v5693_v47 }
 0x3d3   : > { %3618 = vmatpush1.bf16.msra.mxu0 %v3617_v25  ;;  %v4152_v51 = vpop.permute.xlu1 %4151  ;;  %3632 = vmatprep.subr.bf16.mxu1 %v3631_v15  ;;  %v5769_v63 = vsel %vm532_vm3, %v4163_v14, %v4164_v58 }
 0x3d4   : > { %v4154_v17 = vunpack.i.h.bf16 %v4152_v51  ;;  %v4153_v7 = vunpack.i.l.bf16 %v4152_v51  ;;  %3634 = vmatpush1.bf16.msra.mxu1 %v3633_v13  ;;  %v4177_v6 = vpop.permute.xlu0 %4176 }
 0x3d5   : > { %4221 = vrot.lane.b32.xlu1 %v4220_v53, %s4528_s24  ;;  %4216 = vrot.lane.b32.xlu0 %v4215_v43, %s4528_s24  ;;  %v4178_v25 = vunpack.i.l.bf16 %v4177_v6 }
 0x3d6   : > { %v2042_v41 = vsel %vm487_vm5, %v4154_v17, %v2038_v48  ;;  %v5743_v46 = vsel %vm487_vm5, %v4134_v9, %v4153_v7  ;;  %v2041_v62 = vsel %vm487_vm5, %v4153_v7, %v4154_v17  ;;  %v2112_v48 = vsel %vm561_vm4, %v4158_v2, %v4159_v21 }
 0x3d7   : > { %v2109_v42 = vpop.permute.xlu1 %2108  ;;  %v4225_v32 = vpack.i.bf16 %v5743_v46, %v5688_v22  ;;  %v5749_v52 = vpack.i.bf16 %v2042_v41, %v2041_v62  ;;  %v3619_v9 = vpack.c.bf16 %v5752_v30, %v5743_v46  ;;  %v3637_v4 = vpack.c.bf16 %v2112_v48, %v2041_v62 }
 0x3d8   : > { %v2113_v24 = vsel %vm561_vm4, %v4159_v21, %v2109_v42  ;;  %v4182_v39 = vpop.permute.xlu0 %4181  ;;  %v4179_v22 = vunpack.i.h.bf16 %v4177_v6 }
 0x3d9   : > { %4226 = vrot.lane.b32.xlu1 %v4225_v32, %s4528_s24  ;;  %v3635_v29 = vpack.c.bf16 %v2113_v24, %v2042_v41  ;;  %4231 = vrot.lane.b32.xlu0 %v5749_v52, %s4528_s24  ;;  %v5765_v11 = vpack.i.bf16 %v2113_v24, %v2112_v48  ;;  %v4184_v6 = vunpack.i.h.bf16 %v4182_v39  ;;  %v4183_v42 = vunpack.i.l.bf16 %v4182_v39 }
 0x3da   : > { %3620 = vmatprep.subr.bf16.mxu0 %v3619_v9  ;;  %v2263_v41 = vsel %vm458_vm2, %v4179_v22, %v5653_v26  ;;  %v2262_v62 = vsel %vm458_vm2, %v4178_v25, %v4179_v22 }
 0x3db   : > { %3622 = vmatpush1.bf16.msra.mxu0 %v3621_v57  ;;  %v4167_v33 = vpop.permute.xlu1 %4166  ;;  %3636 = vmatprep.subr.bf16.mxu1 %v3635_v29  ;;  %v4260_v48 = vpack.i.bf16 %v2263_v41, %v2262_v62  ;;  %v2331_v57 = vsel %vm384_vm1, %v4183_v42, %v4184_v6 }
 0x3dc   : > { %v4169_v38 = vunpack.i.h.bf16 %v4167_v33  ;;  %v4168_v56 = vunpack.i.l.bf16 %v4167_v33  ;;  %3638 = vmatpush1.bf16.msra.mxu1 %v3637_v4  ;;  %v2395_v32 = vpop.permute.xlu0 %2394 }
 0x3dd   : > { %4236 = vrot.lane.b32.xlu1 %v4235_v31, %s4528_s24  ;;  %4241 = vrot.lane.b32.xlu0 %v5765_v11, %s4528_s24 }
 0x3de   : > { %v2192_v15 = vsel %vm532_vm3, %v4169_v38, %v5651_v34  ;;  %v5774_v2 = vsel %vm532_vm3, %v4164_v58, %v4168_v56  ;;  %v2191_v47 = vsel %vm532_vm3, %v4168_v56, %v4169_v38 }
 0x3df   : > { %v4172_v53 = vpop.permute.xlu1 %4171  ;;  %v5779_v51 = vpack.i.bf16 %v2192_v15, %v2191_v47  ;;  %v3639_v13 = vpack.c.bf16 %v2192_v15, %v5490_v44  ;;  %v4245_v17 = vpack.i.bf16 %v5774_v2, %v5769_v63  ;;  %v3623_v7 = vpack.c.bf16 %v5774_v2, %v5480_v40 }
 0x3e0   : > { %v4174_v34 = vunpack.i.h.bf16 %v4172_v53  ;;  %v4173_v43 = vunpack.i.l.bf16 %v4172_v53  ;;  %v3641_v21 = vpack.c.bf16 %v2191_v47, %v5483_v20  ;;  %v3625_v44 = vpack.c.bf16 %v5769_v63, %v5478_v16  ;;  %v2399_v38 = vpop.permute.xlu0 %2398  ;;  %v2462_v47 = vld [vmem:[#allocation7 + $0x20] sm:$0xff] }
 0x3e1   : > { %4251 = vrot.lane.b32.xlu1 %v5779_v51, %s4528_s24  ;;  %3640 = vmatprep.subr.bf16.mxu1 %v3639_v13  ;;  %v2402_v15 = vsel %vm310_vm0, %v5696_v10, %v2395_v32  ;;  %v2404_v53 = vsel %vm310_vm0, %v5701_v45, %v2399_v38  ;;  %v4275_v10 = vpack.i.bf16 %v5713_v5, %v5710_v60 }
 0x3e2   : > { %v5795_v40 = vsel %vm458_vm2, %v4174_v34, %v4178_v25  ;;  %v5798_v20 = vsel %vm458_vm2, %v4173_v43, %v4174_v34  ;;  %4246 = vrot.lane.b32.xlu0 %v4245_v17, %s4528_s24  ;;  %3624 = vmatprep.subr.bf16.mxu0 %v3623_v7  ;;  %v2405_v25 = vsel %vm310_vm0, %v2399_v38, %v5657_v8  ;;  %v4083_v43 = vunpack.i.l.bf16 %v5659_v19 }
 0x3e3   : > { %3626 = vmatpush1.bf16.msra.mxu0 %v3625_v44  ;;  %3642 = vmatpush1.bf16.msra.mxu1 %v3641_v21  ;;  %v4187_v26 = vpop.permute.xlu1 %4186  ;;  %v4255_v24 = vpack.i.bf16 %v5795_v40, %v5798_v20  ;;  %v3629_v22 = vpack.c.bf16 %v2331_v57, %v5798_v20  ;;  %v4280_v8 = vpack.i.bf16 %v5367_v18, %v5707_v3  ;;  %v4084_v44 = vunpack.i.h.bf16 %v5659_v19 }
 0x3e4   : > { %v4189_v9 = vunpack.i.h.bf16 %v4187_v26  ;;  %v4188_v16 = vunpack.i.l.bf16 %v4187_v26  ;;  %v4285_v13 = vpack.i.bf16 %v5730_v12, %v5716_v36  ;;  %v4295_v3 = vpack.i.bf16 %v5743_v46, %v5704_v55  ;;  %v5871_v12 = vld [vmem:[#allocation2] sm:$0xff]  ;;  %v3511_v46 = vld [vmem:[%s6038_s2 + $0x8] sm:$0xff] }
 0x3e5   : > { %4256 = vrot.lane.b32.xlu1 %v4255_v24, %s4528_s24  ;;  %v4305_v60 = vpack.i.bf16 %v5752_v30, %v5367_v18  ;;  %v4315_v5 = vpack.i.bf16 %v5774_v2, %v5367_v18  ;;  %v4325_v55 = vpack.i.bf16 %v5795_v40, %v5769_v63 }
 0x3e6   : > { %v2332_v29 = vsel %vm384_vm1, %v4184_v6, %v4188_v16  ;;  %v2333_v58 = vsel %vm384_vm1, %v4188_v16, %v4189_v9  ;;  %4261 = vrot.lane.b32.xlu0 %v4260_v48, %s4528_s24  ;;  %v2334_v14 = vsel %vm384_vm1, %v4189_v9, %v5655_v50  ;;  %v2403_v50 = vsel %vm310_vm0, %v2395_v32, %v5701_v45 }
 0x3e7   : > { %v4265_v4 = vpack.i.bf16 %v2332_v29, %v2331_v57  ;;  %v3643_v33 = vpack.c.bf16 %v2334_v14, %v2263_v41  ;;  %v4270_v31 = vpack.i.bf16 %v2334_v14, %v2333_v58  ;;  %v3627_v39 = vpack.c.bf16 %v2332_v29, %v5795_v40 }
 0x3e8   : > { %v3645_v56 = vpack.c.bf16 %v2333_v58, %v2262_v62  ;;  %v4290_v45 = vpack.i.bf16 %v5367_v18, %v5724_v0  ;;  %v4335_v36 = vpack.i.bf16 %v2332_v29, %v5367_v18  ;;  %v4345_v0 = vpack.i.bf16 %v5798_v20, %v5367_v18 }
 0x3e9   : > { %4266 = vrot.lane.b32.xlu1 %v4265_v4, %s4528_s24  ;;  %3644 = vmatprep.subr.bf16.mxu1 %v3643_v33 }
 0x3ea   : > { %4271 = vrot.lane.b32.xlu0 %v4270_v31, %s4528_s24  ;;  %3628 = vmatprep.subr.bf16.mxu0 %v3627_v39 }
 0x3eb   : > { %3630 = vmatpush1.bf16.msra.mxu0 %v3629_v22  ;;  %3646 = vmatpush1.bf16.msra.mxu1 %v3645_v56  ;;  %v4089_v56 = vunpack.i.h.bf16 %v5661_v28  ;;  %v4088_v22 = vunpack.i.l.bf16 %v5661_v28 }
 0x3ec   : > { %2482 = vmatprep.subr.mxu0 %v2403_v50  ;;  %2553 = vmatprep.subr.mxu1 %v2405_v25 }
 0x3ed   : > { %2737 = vrot.lane.b32.xlu1 %v2403_v50, %s4528_s24 }
 0x3ee   : > { %2735 = vrot.lane.b32.xlu0 %v2402_v15, %s4528_s24 }
 0x3ef   : > { %2483 = vmatpush1.msra.mxu0 %v2402_v15  ;;  %2554 = vmatpush1.msra.mxu1 %v2404_v53 }
 0x3f0   : > { %3505 = vmatmul.mubr.msk.f32.vlgmr.msra.gmra.mrb[2].mxu0 %vm918_vm8, %v2462_v47  ;;  %3506 = vmatmul.mubr.msk.f32.vlgmr.msra.gmra.mrb[2].mxu1 %vm918_vm8, %v2462_v47  ;;  %v4108_v47 = vunpack.i.l.bf16 %v5671_v23 }
 0x3f1   : > { %2741 = vrot.lane.b32.xlu1 %v2405_v25, %s4528_s24  ;;  %2953 = vmatprep.mubr.f32.mxu1 %v5367_v18 }
 0x3f2   : > { %2739 = vrot.lane.b32.xlu0 %v2404_v53, %s4528_s24  ;;  %2882 = vmatprep.mubr.f32.mxu0 %v5367_v18 }
 0x3f5   : > { %4281 = vrot.lane.b32.xlu1 %v4280_v8, %s4528_s24 }
 0x3f6   : > { %4276 = vrot.lane.b32.xlu0 %v4275_v10, %s4528_s24 }
 0x3f9   : > { %4291 = vrot.lane.b32.xlu1 %v4290_v45, %s4528_s24 }
 0x3fa   : > { %4286 = vrot.lane.b32.xlu0 %v4285_v13, %s4528_s24 }
 0x3fd   : > { %4296 = vrot.lane.b32.xlu1 %v4295_v3, %s4528_s24 }
 0x3fe   : > { %4301 = vrot.lane.b32.xlu0 %v5749_v52, %s4528_s24 }
 0x401   : > { %4306 = vrot.lane.b32.xlu1 %v4305_v60, %s4528_s24 }
 0x402   : > { %4311 = vrot.lane.b32.xlu0 %v5765_v11, %s4528_s24 }
 0x405   : > { %4321 = vrot.lane.b32.xlu1 %v5779_v51, %s4528_s24 }
 0x406   : > { %4316 = vrot.lane.b32.xlu0 %v4315_v5, %s4528_s24 }
 0x409   : > { %4326 = vrot.lane.b32.xlu1 %v4325_v55, %s4528_s24 }
 0x40a   : > { %4331 = vrot.lane.b32.xlu0 %v4260_v48, %s4528_s24 }
 0x40d   : > { %4336 = vrot.lane.b32.xlu1 %v4335_v36, %s4528_s24 }
 0x40e   : > { %4341 = vrot.lane.b32.xlu0 %v4270_v31, %s4528_s24 }
 0x411   : > { %4346 = vrot.lane.b32.xlu1 %v4345_v0, %s4528_s24 }
 0x412   : > { %3122 = vrot.lane.b32.xlu0 %v2331_v57, %s4528_s24 }
 0x415   : > { %3134 = vrot.lane.b32.xlu1 %v2403_v50, %s4528_s24  ;;  %v4093_v50 = vunpack.i.l.bf16 %v5663_v49 }
 0x416   : > { %3136 = vrot.lane.b32.xlu0 %v2404_v53, %s4528_s24 }
 0x419   : > { %3138 = vrot.lane.b32.xlu1 %v2405_v25, %s4528_s24 }
 0x41a   : > { %3140 = vrot.lane.b32.xlu0 %v5871_v12, %s4528_s24 }
 0x41d   : > { %3132 = vrot.lane.b32.xlu1 %v2402_v15, %s4528_s24  ;;  %v4114_v15 = vunpack.i.h.bf16 %v5669_v61  ;;  %v2760_v61 = vsel %vm1199_vm9, %v4108_v47, %v4109_v54 }
 0x41e   : > { %3367 = vperm.xlu0 %4079, %v3511_v46  }
 0x430   : > { %v5879_v18 = vpop.permute.xlu0 %4191 }
 0x434   : > { %v5881_v52 = vpop.permute.xlu1 %4196 }
 0x437   : > { %v5883_v30 = vpop.permute.xlu0 %4201 }
 0x443   : > { %v4212_v11 = vpop.permute.xlu1 %4211  ;;  %v4207_v63 = vpop.permute.xlu0 %4206 }
 0x444   : > { %v4214_v2 = vunpack.i.h.bf16 %v4212_v11  ;;  %v4213_v51 = vunpack.i.l.bf16 %v4212_v11  ;;  %v4209_v17 = vunpack.i.h.bf16 %v4207_v63  ;;  %v4208_v7 = vunpack.i.l.bf16 %v4207_v63 }
 0x446   : > { %v2745_v32 = vsel %vm1199_vm9, %v4209_v17, %v4213_v51  ;;  %v2743_v40 = vsel %vm1199_vm9, %v4083_v43, %v4208_v7  ;;  %v2746_v20 = vsel %vm1199_vm9, %v4213_v51, %v4214_v2  ;;  %v2744_v14 = vsel %vm1199_vm9, %v4208_v7, %v4209_v17 }
 0x447   : > { %v4222_v34 = vpop.permute.xlu1 %4221  ;;  %v4217_v62 = vpop.permute.xlu0 %4216 }
 0x448   : > { %v4224_v21 = vunpack.i.h.bf16 %v4222_v34  ;;  %v4223_v41 = vunpack.i.l.bf16 %v4222_v34  ;;  %v4219_v6 = vunpack.i.h.bf16 %v4217_v62  ;;  %v4218_v42 = vunpack.i.l.bf16 %v4217_v62 }
 0x44a   : > { %v2750_v26 = vsel %vm1199_vm9, %v4223_v41, %v4224_v21  ;;  %v2749_v24 = vsel %vm1199_vm9, %v4219_v6, %v4223_v41  ;;  %v2747_v9 = vsel %vm1199_vm9, %v4084_v44, %v4218_v42  ;;  %v2748_v48 = vsel %vm1199_vm9, %v4218_v42, %v4219_v6 }
 0x44b   : > { %v4227_v16 = vpop.permute.xlu1 %4226  ;;  %v3663_v57 = vpack.c.bf16 %v2750_v26, %v2746_v20  ;;  %v3649_v29 = vpack.c.bf16 %v2747_v9, %v2743_v40  ;;  %v3665_v19 = vpack.c.bf16 %v2749_v24, %v2745_v32  ;;  %v4232_v58 = vpop.permute.xlu0 %4231  ;;  %v3647_v31 = vpack.c.bf16 %v2748_v48, %v2744_v14 }
 0x44c   : > { %v4229_v4 = vunpack.i.h.bf16 %v4227_v16  ;;  %v4228_v33 = vunpack.i.l.bf16 %v4227_v16  ;;  %v4234_v39 = vunpack.i.h.bf16 %v4232_v58  ;;  %v4233_v38 = vunpack.i.l.bf16 %v4232_v58 }
 0x44d   : > { %3664 = vmatprep.subr.bf16.mxu1 %v3663_v57  ;;  %3648 = vmatprep.subr.bf16.mxu0 %v3647_v31  ;;  %v4094_v21 = vunpack.i.h.bf16 %v5663_v49  ;;  %v2759_v44 = vsel %vm1199_vm9, %v4093_v50, %v4108_v47  ;;  %v2762_v6 = vsel %vm1199_vm9, %v4113_v27, %v4114_v15  ;;  %v4098_v58 = vunpack.i.l.bf16 %v5665_v1 }
 0x44e   : > { %3666 = vmatpush1.bf16.msra.mxu1 %v3665_v19  ;;  %3650 = vmatpush1.bf16.msra.mxu0 %v3649_v29  ;;  %v2751_v45 = vsel %vm1199_vm9, %v4088_v22, %v4228_v33  ;;  %v2752_v60 = vsel %vm1199_vm9, %v4228_v33, %v4229_v4  ;;  %v2753_v28 = vsel %vm1199_vm9, %v4229_v4, %v4233_v38  ;;  %v4099_v4 = vunpack.i.h.bf16 %v5665_v1 }
 0x44f   : > { %v4237_v25 = vpop.permute.xlu1 %4236  ;;  %v4242_v10 = vpop.permute.xlu0 %4241  ;;  %v2754_v36 = vsel %vm1199_vm9, %v4233_v38, %v4234_v39 }
 0x450   : > { %v4239_v53 = vunpack.i.h.bf16 %v4237_v25  ;;  %v4238_v8 = vunpack.i.l.bf16 %v4237_v25  ;;  %v4244_v13 = vunpack.i.h.bf16 %v4242_v10  ;;  %v4243_v3 = vunpack.i.l.bf16 %v4242_v10 }
 0x452   : > { %v2755_v5 = vsel %vm1199_vm9, %v4089_v56, %v4238_v8  ;;  %v2756_v55 = vsel %vm1199_vm9, %v4238_v8, %v4239_v53  ;;  %v2757_v46 = vsel %vm1199_vm9, %v4239_v53, %v4243_v3  ;;  %v2758_v2 = vsel %vm1199_vm9, %v4243_v3, %v4244_v13 }
 0x453   : > { %v3653_v0 = vpack.c.bf16 %v2755_v5, %v2751_v45  ;;  %v4252_v11 = vpop.permute.xlu1 %4251  ;;  %v3651_v63 = vpack.c.bf16 %v2756_v55, %v2752_v60  ;;  %v3669_v51 = vpack.c.bf16 %v2757_v46, %v2753_v28  ;;  %v3667_v43 = vpack.c.bf16 %v2758_v2, %v2754_v36  ;;  %v2415_v46 = vld [vmem:[#allocation7 + $0x18] sm:$0xff] }
 0x454   : > { %v4254_v17 = vunpack.i.h.bf16 %v4252_v11  ;;  %v4253_v7 = vunpack.i.l.bf16 %v4252_v11  ;;  %v4247_v34 = vpop.permute.xlu0 %4246  ;;  %v4193_v60 = vunpack.i.l.bf16 %v5879_v18 }
 0x455   : > { %v4249_v41 = vunpack.i.h.bf16 %v4247_v34  ;;  %v4248_v62 = vunpack.i.l.bf16 %v4247_v34  ;;  %3652 = vmatprep.subr.bf16.mxu0 %v3651_v63  ;;  %3668 = vmatprep.subr.bf16.mxu1 %v3667_v43 }
 0x456   : > { %3654 = vmatpush1.bf16.msra.mxu0 %v3653_v0  ;;  %v2766_v42 = vsel %vm1199_vm9, %v4253_v7, %v4254_v17  ;;  %3670 = vmatpush1.bf16.msra.mxu1 %v3669_v51 }
 0x457   : > { %v2765_v32 = vsel %vm1199_vm9, %v4249_v41, %v4253_v7  ;;  %v2763_v40 = vsel %vm1199_vm9, %v4094_v21, %v4248_v62  ;;  %v4257_v20 = vpop.permute.xlu1 %4256  ;;  %v2764_v49 = vsel %vm1199_vm9, %v4248_v62, %v4249_v41  ;;  %v3671_v26 = vpack.c.bf16 %v2766_v42, %v2762_v6 }
 0x458   : > { %v3673_v24 = vpack.c.bf16 %v2765_v32, %v5680_v35  ;;  %v3657_v9 = vpack.c.bf16 %v2763_v40, %v2759_v44  ;;  %v4262_v16 = vpop.permute.xlu0 %4261  ;;  %v4259_v27 = vunpack.i.h.bf16 %v4257_v20  ;;  %v4258_v48 = vunpack.i.l.bf16 %v4257_v20 }
 0x459   : > { %v3655_v57 = vpack.c.bf16 %v2764_v49, %v2760_v61  ;;  %3672 = vmatprep.subr.bf16.mxu1 %v3671_v26  ;;  %v4264_v29 = vunpack.i.h.bf16 %v4262_v16  ;;  %v4263_v19 = vunpack.i.l.bf16 %v4262_v16 }
 0x45a   : > { %3674 = vmatpush1.bf16.msra.mxu1 %v3673_v24  ;;  %v2767_v23 = vsel %vm1199_vm9, %v4098_v58, %v4258_v48  ;;  %v2768_v38 = vsel %vm1199_vm9, %v4258_v48, %v4259_v27  ;;  %v4194_v24 = vunpack.i.h.bf16 %v5879_v18  ;;  %v4103_v48 = vunpack.i.l.bf16 %v5667_v59 }
 0x45b   : > { %3656 = vmatprep.subr.bf16.mxu0 %v3655_v57  ;;  %v4267_v14 = vpop.permute.xlu1 %4266  ;;  %v2769_v56 = vsel %vm1199_vm9, %v4259_v27, %v4263_v19  ;;  %v2770_v25 = vsel %vm1199_vm9, %v4263_v19, %v4264_v29  ;;  %v4118_v18 = vunpack.i.l.bf16 %v5682_v37 }
 0x45c   : > { %3658 = vmatpush1.bf16.msra.mxu0 %v3657_v9  ;;  %v4269_v35 = vunpack.i.h.bf16 %v4267_v14  ;;  %v4268_v33 = vunpack.i.l.bf16 %v4267_v14  ;;  %v4272_v31 = vpop.permute.xlu0 %4271 }
 0x45d   : > { %v4274_v54 = vunpack.i.h.bf16 %v4272_v31  ;;  %v4273_v39 = vunpack.i.l.bf16 %v4272_v31 }
 0x45e   : > { %v2771_v22 = vsel %vm1199_vm9, %v4099_v4, %v4268_v33  ;;  %v2772_v50 = vsel %vm1199_vm9, %v4268_v33, %v4269_v35  ;;  %v4119_v4 = vunpack.i.h.bf16 %v5682_v37 }
 0x45f   : > { %v3661_v15 = vpack.c.bf16 %v2771_v22, %v2767_v23  ;;  %v2773_v1 = vsel %vm1199_vm9, %v4269_v35, %v4273_v39  ;;  %v2738_v47 = vpop.permute.xlu1 %2737  ;;  %v3659_v53 = vpack.c.bf16 %v2772_v50, %v2768_v38  ;;  %v2774_v8 = vsel %vm1199_vm9, %v4273_v39, %v4274_v54 }
 0x460   : > { %v3677_v10 = vpack.c.bf16 %v2773_v1, %v2769_v56  ;;  %v2736_v45 = vpop.permute.xlu0 %2735  ;;  %v3675_v13 = vpack.c.bf16 %v2774_v8, %v2770_v25  ;;  %v4199_v35 = vunpack.i.h.bf16 %v5881_v52  ;;  %v4198_v23 = vunpack.i.l.bf16 %v5881_v52 }
 0x461   : > { %3660 = vmatprep.subr.bf16.mxu0 %v3659_v53  ;;  %v2776_v3 = vsel %vm1199_vm9, %v2736_v45, %v2738_v47  ;;  %v2775_v55 = vsel %vm1199_vm9, %v4193_v60, %v2736_v45  ;;  %v4203_v54 = vunpack.i.l.bf16 %v5883_v30  ;;  %v4204_v22 = vunpack.i.h.bf16 %v5883_v30 }
 0x462   : > { %3676 = vmatprep.subr.bf16.mxu1 %v3675_v13  ;;  %3662 = vmatpush1.bf16.msra.mxu0 %v3661_v15 }
 0x463   : > { %3678 = vmatpush1.bf16.msra.mxu1 %v3677_v10  ;;  %v2742_v28 = vpop.permute.xlu1 %2741  ;;  %2834 = vmatprep.subr.mxu0 %v2776_v3 }
 0x464   : > { %v2740_v5 = vpop.permute.xlu0 %2739 }
 0x465   : > { %v2777_v36 = vsel %vm1199_vm9, %v2738_v47, %v2740_v5  ;;  %v2778_v0 = vsel %vm1199_vm9, %v2740_v5, %v2742_v28 }
 0x466   : > { %2905 = vmatprep.subr.mxu1 %v2778_v0  ;;  %2835 = vmatpush1.msra.mxu0 %v2775_v55 }
 0x467   : > { %2906 = vmatpush1.msra.mxu1 %v2777_v36  ;;  %v4282_v11 = vpop.permute.xlu1 %4281  ;;  %3507 = vmatmul.mubr.msk.f32.vlgmr.msra.gmra.mrb[2].mxu0 %vm918_vm8, %v2415_v46 }
 0x468   : > { %v4277_v63 = vpop.permute.xlu0 %4276  ;;  %3508 = vmatmul.mubr.msk.f32.vlgmr.msra.gmra.mrb[2].mxu1 %vm918_vm8, %v2415_v46  ;;  %3281 = vmatprep.mubr.f32.mxu0 %v5871_v12  ;;  %v4284_v2 = vunpack.i.h.bf16 %v4282_v11  ;;  %v4283_v51 = vunpack.i.l.bf16 %v4282_v11  ;;  %v3160_v46 = vsel %vm1199_vm9, %v4118_v18, %v4119_v4 }
 0x469   : > { %3352 = vmatprep.mubr.f32.mxu1 %v5871_v12  ;;  %v4279_v17 = vunpack.i.h.bf16 %v4277_v63  ;;  %v4278_v7 = vunpack.i.l.bf16 %v4277_v63 }
 0x46a   : > { %v3145_v42 = vsel %vm1199_vm9, %v4283_v51, %v4284_v2  ;;  %v4104_v2 = vunpack.i.h.bf16 %v5667_v59 }
 0x46b   : > { %v4292_v34 = vpop.permute.xlu1 %4291  ;;  %v3144_v6 = vsel %vm1199_vm9, %v4279_v17, %v4283_v51  ;;  %v3143_v12 = vsel %vm1199_vm9, %v4278_v7, %v4279_v17  ;;  %v3142_v29 = vsel %vm1199_vm9, %v4194_v24, %v4278_v7  ;;  %v3159_v17 = vsel %vm1199_vm9, %v4204_v22, %v4118_v18 }
 0x46c   : > { %v4294_v43 = vunpack.i.h.bf16 %v4292_v34  ;;  %v4293_v21 = vunpack.i.l.bf16 %v4292_v34  ;;  %v4287_v41 = vpop.permute.xlu0 %4286 }
 0x46d   : > { %v4289_v62 = vunpack.i.h.bf16 %v4287_v41  ;;  %v4288_v44 = vunpack.i.l.bf16 %v4287_v41 }
 0x46e   : > { %v3149_v32 = vsel %vm1199_vm9, %v4293_v21, %v4294_v43 }
 0x46f   : > { %v3148_v40 = vsel %vm1199_vm9, %v4289_v62, %v4293_v21  ;;  %v4297_v20 = vpop.permute.xlu1 %4296  ;;  %v3147_v49 = vsel %vm1199_vm9, %v4288_v44, %v4289_v62  ;;  %v3695_v26 = vpack.c.bf16 %v3149_v32, %v3145_v42 }
 0x470   : > { %v3697_v9 = vpack.c.bf16 %v3148_v40, %v3144_v6  ;;  %v4298_v16 = vunpack.i.l.bf16 %v4297_v20  ;;  %v4302_v61 = vpop.permute.xlu0 %4301  ;;  %v3679_v27 = vpack.c.bf16 %v3147_v49, %v3143_v12  ;;  %v4299_v57 = vunpack.i.h.bf16 %v4297_v20 }
 0x471   : > { %3696 = vmatprep.subr.bf16.mxu1 %v3695_v26  ;;  %v4304_v58 = vunpack.i.h.bf16 %v4302_v61  ;;  %v4303_v14 = vunpack.i.l.bf16 %v4302_v61  ;;  %v3158_v6 = vsel %vm1199_vm9, %v4104_v2, %v4204_v22 }
 0x472   : > { %v3146_v19 = vsel %vm1199_vm9, %v4298_v16, %v4288_v44  ;;  %3680 = vmatprep.subr.bf16.mxu0 %v3679_v27  ;;  %3698 = vmatpush1.bf16.msra.mxu1 %v3697_v9  ;;  %v3150_v50 = vsel %vm1199_vm9, %v4199_v35, %v4299_v57 }
 0x473   : > { %v3681_v33 = vpack.c.bf16 %v3146_v19, %v3142_v29  ;;  %v4307_v31 = vpop.permute.xlu1 %4306  ;;  %v3152_v37 = vsel %vm1199_vm9, %v4303_v14, %v4304_v58  ;;  %v3151_v47 = vsel %vm1199_vm9, %v4299_v57, %v4303_v14 }
 0x474   : > { %v4309_v39 = vunpack.i.h.bf16 %v4307_v31  ;;  %v4308_v38 = vunpack.i.l.bf16 %v4307_v31  ;;  %v4312_v56 = vpop.permute.xlu0 %4311 }
 0x475   : > { %v4314_v25 = vunpack.i.h.bf16 %v4312_v56  ;;  %v4313_v15 = vunpack.i.l.bf16 %v4312_v56  ;;  %3682 = vmatpush1.bf16.msra.mxu0 %v3681_v33 }
 0x476   : > { %v3154_v1 = vsel %vm1199_vm9, %v4203_v54, %v4309_v39  ;;  %v3153_v52 = vsel %vm1199_vm9, %v4304_v58, %v4308_v38 }
 0x477   : > { %v3685_v53 = vpack.c.bf16 %v3154_v1, %v3150_v50  ;;  %v3156_v8 = vsel %vm1199_vm9, %v4313_v15, %v4314_v25  ;;  %v4322_v10 = vpop.permute.xlu1 %4321  ;;  %v3155_v45 = vsel %vm1199_vm9, %v4309_v39, %v4313_v15  ;;  %v3157_v30 = vsel %vm1199_vm9, %v4314_v25, %v4198_v23  ;;  %v2961_v1 = vld [vmem:[#allocation7 + $0x28] sm:$0xff] }
 0x478   : > { %v3701_v13 = vpack.c.bf16 %v3156_v8, %v3152_v37  ;;  %v4324_v3 = vunpack.i.h.bf16 %v4322_v10  ;;  %v4323_v60 = vunpack.i.l.bf16 %v4322_v10  ;;  %v4317_v28 = vpop.permute.xlu0 %4316  ;;  %v3683_v5 = vpack.c.bf16 %v3155_v45, %v3151_v47 }
 0x479   : > { %v4319_v55 = vunpack.i.h.bf16 %v4317_v28  ;;  %v4318_v36 = vunpack.i.l.bf16 %v4317_v28  ;;  %v3699_v0 = vpack.c.bf16 %v3157_v30, %v3153_v52 }
 0x47a   : > { %v3164_v11 = vsel %vm1199_vm9, %v4323_v60, %v4324_v3  ;;  %3684 = vmatprep.subr.bf16.mxu0 %v3683_v5  ;;  %v3165_v63 = vsel %vm1199_vm9, %v4324_v3, %v4103_v48 }
 0x47b   : > { %3700 = vmatprep.subr.bf16.mxu1 %v3699_v0  ;;  %3686 = vmatpush1.bf16.msra.mxu0 %v3685_v53  ;;  %v4327_v51 = vpop.permute.xlu1 %4326  ;;  %v3163_v7 = vsel %vm1199_vm9, %v4319_v55, %v4323_v60  ;;  %v3161_v34 = vsel %vm1199_vm9, %v4119_v4, %v4318_v36  ;;  %v3705_v43 = vpack.c.bf16 %v3164_v11, %v3160_v46 }
 0x47c   : > { %3702 = vmatpush1.bf16.msra.mxu1 %v3701_v13  ;;  %v4328_v21 = vunpack.i.l.bf16 %v4327_v51  ;;  %v4332_v41 = vpop.permute.xlu0 %4331  ;;  %v3687_v62 = vpack.c.bf16 %v3163_v7, %v3159_v17  ;;  %v3703_v44 = vpack.c.bf16 %v3165_v63, %v3161_v34  ;;  %v4329_v59 = vunpack.i.h.bf16 %v4327_v51 }
 0x47d   : > { %v4333_v40 = vunpack.i.l.bf16 %v4332_v41  ;;  %v4334_v16 = vunpack.i.h.bf16 %v4332_v41 }
 0x47e   : > { %v3162_v42 = vsel %vm1199_vm9, %v4328_v21, %v4319_v55  ;;  %3688 = vmatprep.subr.bf16.mxu0 %v3687_v62  ;;  %3704 = vmatprep.subr.bf16.mxu1 %v3703_v44 }
 0x47f   : > { %v3689_v32 = vpack.c.bf16 %v3162_v42, %v3158_v6  ;;  %v4337_v20 = vpop.permute.xlu1 %4336  ;;  %v3167_v27 = vsel %vm1199_vm9, %v4329_v59, %v4333_v40  ;;  %v3168_v31 = vsel %vm1199_vm9, %v4333_v40, %v4334_v16 }
 0x480   : > { %3706 = vmatpush1.bf16.msra.mxu1 %v3705_v43  ;;  %v4339_v12 = vunpack.i.h.bf16 %v4337_v20  ;;  %v4342_v49 = vpop.permute.xlu0 %4341  ;;  %v4338_v9 = vunpack.i.l.bf16 %v4337_v20 }
 0x481   : > { %v4344_v26 = vunpack.i.h.bf16 %v4342_v49  ;;  %v4343_v24 = vunpack.i.l.bf16 %v4342_v49  ;;  %3690 = vmatpush1.bf16.msra.mxu0 %v3689_v32 }
 0x482   : > { %v3169_v35 = vsel %vm1199_vm9, %v4334_v16, %v4338_v9 }
 0x483   : > { %v4347_v61 = vpop.permute.xlu1 %4346  ;;  %v3171_v48 = vsel %vm1199_vm9, %v4339_v12, %v4343_v24  ;;  %v3172_v14 = vsel %vm1199_vm9, %v4343_v24, %v4344_v26 }
 0x484   : > { %v4349_v57 = vunpack.i.h.bf16 %v4347_v61  ;;  %v4348_v29 = vunpack.i.l.bf16 %v4347_v61  ;;  %v3123_v19 = vpop.permute.xlu0 %3122  ;;  %v3691_v58 = vpack.c.bf16 %v3171_v48, %v3167_v27  ;;  %v3709_v38 = vpack.c.bf16 %v3172_v14, %v3168_v31 }
 0x485   : > { %v3170_v18 = vsel %vm1199_vm9, %v3123_v19, %v4339_v12 }
 0x486   : > { %v3166_v4 = vsel %vm1199_vm9, %v4349_v57, %v4329_v59  ;;  %3692 = vmatprep.subr.bf16.mxu0 %v3691_v58  ;;  %v3173_v33 = vsel %vm1199_vm9, %v4344_v26, %v4348_v29 }
 0x487   : > { %v3693_v23 = vpack.c.bf16 %v3170_v18, %v3166_v4  ;;  %v3135_v54 = vpop.permute.xlu1 %3134  ;;  %v3707_v39 = vpack.c.bf16 %v3173_v33, %v3169_v35 }
 0x488   : > { %v3137_v56 = vpop.permute.xlu0 %3136 }
 0x489   : > { %3694 = vmatpush1.bf16.msra.mxu0 %v3693_v23  ;;  %3708 = vmatprep.subr.bf16.mxu1 %v3707_v39  ;;  %v3175_v22 = vsel %vm1199_vm9, %v3135_v54, %v3137_v56 }
 0x48a   : > { %3233 = vmatprep.subr.mxu0 %v3175_v22  ;;  %3710 = vmatpush1.bf16.msra.mxu1 %v3709_v38 }
 0x48b   : > { %v3139_v50 = vpop.permute.xlu1 %3138 }
 0x48c   : > { %v3176_v25 = vsel %vm1199_vm9, %v3137_v56, %v3139_v50  ;;  %v3141_v15 = vpop.permute.xlu0 %3140 }
 0x48d   : > { %v3177_v37 = vsel %vm1199_vm9, %v3139_v50, %v3141_v15 }
 0x48e   : > { %3304 = vmatprep.subr.mxu1 %v3177_v37 }
 0x48f   : > { %3305 = vmatpush1.msra.mxu1 %v3176_v25  ;;  %v3133_v47 = vpop.permute.xlu1 %3132 }
 0x490   : > { %v3174_v52 = vsel %vm1199_vm9, %v3133_v47, %v3135_v54  ;;  %3510 = vmatmul.mubr.msk.f32.vlgmr.msra.gmra.mrb[2].mxu1 %vm918_vm8, %v2961_v1 }
 0x491   : > { %3234 = vmatpush1.msra.mxu0 %v3174_v52 }
 0x492   : > { %3509 = vmatmul.mubr.msk.f32.vlgmr.msra.gmra.mrb[2].mxu0 %vm918_vm8, %v2961_v1 }
 0x49d   : > { %v3368_v53 = vpop.permute.xlu0 %3367 }
 0x563   : > { %v3354_v8 = vpop.f32.mrb[2].mxu1 }
 0x564   : > { %v3372_v10 = vadd.f32 %v3368_v53, %v3354_v8  ;;  %v3356_v45 = vpop.f32.mrb[3].mxu1 }
 0x565   : > { %v3373_v30 = vadd.f32 %v3368_v53, %v3356_v45  ;;  %v3283_v13 = vpop.f32.mrb[2].mxu0 }
 0x566   : > { %v3376_v3 = vmax.f32 %v3372_v10, 0.0  ;;  %v3370_v60 = vadd.f32 %v3368_v53, %v3283_v13  ;;  %v3285_v28 = vpop.f32.mrb[3].mxu0 }
 0x567   : > { %v3377_v5 = vmax.f32 %v3373_v30, 0.0  ;;  %v3371_v55 = vadd.f32 %v3368_v53, %v3285_v28 }
 0x568   : > { %3380 = vst [vmem:[%s242_s10 + $0x10] sm:$0xff] %v3376_v3  ;;  %v3374_v36 = vmax.f32 %v3370_v60, 0.0 }
 0x569   : > { %3381 = vst [vmem:[%s242_s10 + $0x18] sm:$0xff] %v3377_v5  ;;  %v3375_v0 = vmax.f32 %v3371_v55, 0.0 }
 0x56a   : > { %3378 = vst [vmem:[%s242_s10] sm:$0xff] %v3374_v36 }
 0x56b   : > { %3379 = vst [vmem:[%s242_s10 + $0x8] sm:$0xff] %v3375_v0 }
 0x56c   : > { %4453 = shalt.err (!%p4450_p2)
}
 0x56d   : > { %s4454_s5 = scalar_lea.hbm %s5992_s6, 512  ;;  %s4458_s28 = scalar_lea.hbm %s6040_s4, 1024 }
 0x56e   : > { %p4455_p13 = scmp.ne.s32.totalorder %s5992_s6, %s4454_s5  ;;  %p4459_p4 = scmp.lt.u32.totalorder %s5992_s6, %s6040_s4 }
 0x56f   : > { %p4460_p7 = scmp.lt.u32.totalorder %s4458_s28, %s4454_s5  ;;  %p4462_p8 = scmp.lt.u32.totalorder %s4454_s5, %s5992_s6 }
 0x570   : > { %p4456_p6 = pnand %p4455_p13, %p6054_p0 }
 0x571   : > { %p4461_p11 = por %p4460_p7, %p4459_p4 }
 0x572   : > { %p4457_p10 = pneg %p4456_p6 }
 0x573   : > { %p4463_p1 = por %p4462_p8, %p4461_p11 }
 0x575   : > { %p4464_p3 = pnand %p4463_p1, %p4457_p10 }
 0x577   : > { %4467 = shalt.err (!%p4464_p3)
}
 0x578   : > { %3737 = dma.vmem_to_hbm [thread:$0]  (%p6054_p0), %s5994_s21, 512, %s5992_s6, %s3383_s19  }
 0x579 PF: > { %s3409_s8 = sand.u32 1, %s4498_s15   ;;  %p6055_p5 = scmp.ne.s32.totalorder %s6045_s22, 0 }
 0x57a   : > { %p6056_p9 = scmp.ge.s32.totalorder %s4510_s18, 2  ;;  %s3410_s9 = scalar_lea.sflag [#allocation6], %s3409_s8 }
 0x57c   : > { %p3751_p12 = pnand %p6056_p9, %p6055_p5 }
 0x57e   : > { %4493 = dma.done.wait (!%p3751_p12), %s3410_s9, 512  }
 0x57f   : > { %4495 = vsyncadd (!%p3751_p12), %s3410_s9, 4294966784  ;;  %p18_p2 = scmp.ge.s32.totalorder %s4666_s11, 4   ;;  %s6057_s15 = smov %s4502_s16 }
 0x580   : > { %s6058_s16 = smov %s4506_s17  ;;  %s6059_s17 = smov %s4675_s14 }
 0x581   : > { %s6060_s18 = smov %s4666_s11  ;;  %20 = sbr.rel (!%p18_p2) target bundleno = 6 (0x6), region = 102 }
 0x588   :  { %3415 = vsyncpa [#allocation5], 1 }
 0x589   :  { %3417 = vsyncpa [#allocation5 + $0x1], 1 }
 0x58a   :  { %3418 = vsyncpa [#allocation8], 1 }
 0x58b   :  { %3419 = vsyncpa [#allocation6], 1 }
 0x58c   :  { %3421 = vsyncpa [#allocation6 + $0x1], 1 }

</bundles_post_ra>
